<compile_context>
chip_gen: v6e
topology: v6e:2x2x1
jax: 0.10.0
libtpu: 0.0.40
codegen_flags: <defaults>
</compile_context>

<pallas_src>
import math
import numpy as np
import jax
import jax.numpy as jnp
from jax import lax
from jax.experimental import pallas as pl
from jax.experimental.pallas import tpu as pltpu

# ----- hyperparameters (hp) -----
B = 2
WINDOW = 16          # hp.window (even -> rfft feature sizes line up with Linear fan-in)
COND = 8             # hp.condition_emb_dim
LATENT = 8           # hp.latent_dim
D_MODEL = 32         # hp.d_model
D_INNER = 64         # hp.d_inner
N_HEAD = 4           # hp.n_head
D_K = D_INNER // N_HEAD
D_V = D_INNER // N_HEAD
KSIZE = 8            # hp.kernel_size (even)
STRIDE = 4           # hp.stride
HIDDEN = 100         # hidden_dims = [100, 100]
NPATCH = (WINDOW - KSIZE) // STRIDE + 1
BL = B * NPATCH

SLAB_W = 128         # lane width of the packed parameter / input / output slabs

# ----- packed-parameter slab layout (row offsets, all widths <= 128) -----
_W_ENTRIES = [
    ("eg_w", WINDOW, COND),
    ("el_w", KSIZE + 2, D_MODEL),
    ("fc_w", N_HEAD * D_V, D_MODEL),
    ("f1_w", D_MODEL, D_INNER),
    ("f2_w", D_INNER, D_MODEL),
    ("ol_w", D_MODEL, COND),
    ("e1_w", WINDOW + 2 * COND, HIDDEN),     # rows: [x | f_global | f_local]
    ("e2_w", HIDDEN, HIDDEN),
    ("fmuva_w", HIDDEN, 2 * LATENT),         # cols: [mu | var]
    ("di_w", LATENT + 2 * COND, HIDDEN),     # rows: [z | f_global | f_local]
    ("d1_w", HIDDEN, HIDDEN),
    ("d2_w", HIDDEN, WINDOW),
    ("mxvx_w", WINDOW, 2 * WINDOW),          # cols: [mu_x | var_x]
    ("eg_b", 1, COND),
    ("el_b", 1, D_MODEL),
    ("ln1_g", 1, D_MODEL),
    ("ln1_b", 1, D_MODEL),
    ("f1_b", 1, D_INNER),
    ("f2_b", 1, D_MODEL),
    ("ln2_g", 1, D_MODEL),
    ("ln2_b", 1, D_MODEL),
    ("ol_b", 1, COND),
    ("e1_b", 1, HIDDEN),
    ("e2_b", 1, HIDDEN),
    ("fmuva_b", 1, 2 * LATENT),
    ("di_b", 1, HIDDEN),
    ("d1_b", 1, HIDDEN),
    ("d2_b", 1, WINDOW),
    ("mxvx_b", 1, 2 * WINDOW),
]


def _build_offsets():
    off = {}
    r = 0
    for name, rows, cols in _W_ENTRIES:
        if rows > 1:                      # sublane-align the 2D weights
            r = ((r + 7) // 8) * 8
        off[name] = (r, rows, cols)
        r += rows
    return off, ((r + 7) // 8) * 8


_OFF, SLAB_ROWS = _build_offsets()

# input slab layout: row 0..B-1 = [x | fg_feat | y | eps_x | eps_z], rows B.. = fl_feat
_IN_ROWS = B + BL
_OUT_USED = 3 * WINDOW + 2 * LATENT + 1   # mu_x | var_x | rec_x | mu | var | loss


def _cvae_kernel(in_ref, w_ref, wqkv_ref, out_ref):
    f32 = jnp.float32

    def w(name, r_lo=0, r_hi=None):
        r0, nr, nc = _OFF[name]
        hi = nr if r_hi is None else r_hi
        return w_ref[r0 + r_lo:r0 + hi, :nc]

    def b(name):
        r0, _, nc = _OFF[name]
        return w_ref[r0:r0 + 1, :nc]          # (1, nc) -> broadcasts over rows

    def mm(a, wgt):
        return jnp.dot(a, wgt, preferred_element_type=f32)

    def layer_norm(v, g, beta, eps=1e-6):
        mean = jnp.mean(v, axis=-1, keepdims=True)
        var = jnp.mean((v - mean) ** 2, axis=-1, keepdims=True)
        return (v - mean) * lax.rsqrt(var + eps) * g + beta

    def softplus(v):
        # matches torch.nn.Softplus(beta=1, threshold=20)
        return jnp.where(v > 20.0, v, jnp.log(1.0 + jnp.exp(jnp.minimum(v, 20.0))))

    # ---------------- unpack the packed input slab ----------------
    main = in_ref[0:B, :]                                   # (B, 128)
    x = main[:, 0:WINDOW]
    fg_in = main[:, WINDOW:2 * WINDOW]
    y = main[:, 2 * WINDOW:3 * WINDOW]
    eps_x = main[:, 3 * WINDOW:4 * WINDOW]
    eps_z = main[:, 4 * WINDOW:4 * WINDOW + LATENT]
    fl_in = in_ref[B:B + BL, 0:KSIZE + 2]                   # (B*L, K+2)

    # ---------------- get_conditon ----------------
    f_global = jnp.tanh(mm(fg_in, w("eg_w")) + b("eg_b"))   # (B, C)
    fl = jnp.tanh(mm(fl_in, w("el_w")) + b("el_b"))         # (B*L, D_MODEL)

    # fused q/k/v projection; 1/sqrt(d_k) pre-folded into the q columns at init
    qkv = mm(fl, wqkv_ref[...])                             # (B*L, 3*H*Dk)
    q = qkv[:, 0:N_HEAD * D_K]
    k = qkv[:, N_HEAD * D_K:2 * N_HEAD * D_K]
    v = qkv[:, 2 * N_HEAD * D_K:3 * N_HEAD * D_K]

    # block-diagonal additive mask: a patch only attends inside its own batch row
    ib = lax.broadcasted_iota(jnp.int32, (BL, BL), 0)
    jb = lax.broadcasted_iota(jnp.int32, (BL, BL), 1)
    same = None
    for bi in range(B):
        lo, hi = bi * NPATCH, (bi + 1) * NPATCH
        blk = ((ib >= lo) & (ib < hi)) & ((jb >= lo) & (jb < hi))
        same = blk if same is None else (same | blk)
    attn_bias = jnp.where(same, 0.0, -1e30).astype(f32)     # (B*L, B*L)

    # multi-head self-attention (post-norm encoder layer)
    heads = []
    for h in range(N_HEAD):
        qh = q[:, h * D_K:(h + 1) * D_K]
        kh = k[:, h * D_K:(h + 1) * D_K]
        vh = v[:, h * D_V:(h + 1) * D_V]
        s = lax.dot_general(qh, kh, (((1,), (1,)), ((), ())),
                            preferred_element_type=f32) + attn_bias      # (B*L, B*L)
        s = s - jnp.max(s, axis=-1, keepdims=True)
        e = jnp.exp(s)
        a = e * pl.reciprocal(jnp.sum(e, axis=-1, keepdims=True), approx=True)
        heads.append(mm(a, vh))                                          # (B*L, Dv)
    attn = jnp.concatenate(heads, axis=-1)                               # (B*L, H*Dv)

    attn = mm(attn, w("fc_w")) + fl                                      # dropout = identity
    attn = layer_norm(attn, b("ln1_g"), b("ln1_b"))

    ff = jnp.maximum(mm(attn, w("f1_w")) + b("f1_b"), 0.0)
    ff = mm(ff, w("f2_w")) + b("f2_b")
    enc_out = layer_norm(ff + attn, b("ln2_g"), b("ln2_b"))              # (B*L, D_MODEL)

    # select the last patch of every batch row via a tiny selection matmul,
    # then apply out_linear only to the selected rows (same result, less work)
    rb = lax.broadcasted_iota(jnp.int32, (B, BL), 0)
    cb = lax.broadcasted_iota(jnp.int32, (B, BL), 1)
    sel = jnp.where(cb == rb * NPATCH + (NPATCH - 1), 1.0, 0.0).astype(f32)
    enc_last = mm(sel, enc_out)                                          # (B, D_MODEL)
    f_local = jnp.tanh(mm(enc_last, w("ol_w")) + b("ol_b"))              # (B, C)
    # TODO(synk): self.dropout(condition) is stochastic in train mode; treated as identity.

    # ---------------- encode ---------------- (concat folded into split weights)
    h1 = jnp.tanh(mm(x, w("e1_w", 0, WINDOW))
                  + mm(f_global, w("e1_w", WINDOW, WINDOW + COND))
                  + mm(f_local, w("e1_w", WINDOW + COND, WINDOW + 2 * COND))
                  + b("e1_b"))
    h2 = jnp.tanh(mm(h1, w("e2_w")) + b("e2_b"))                         # (B, HIDDEN)
    muvar = mm(h2, w("fmuva_w")) + b("fmuva_b")                          # (B, 2*LATENT)
    mu = muvar[:, 0:LATENT]
    var = softplus(muvar[:, LATENT:2 * LATENT])

    # ---------------- reparameterize ----------------
    z = eps_z * jnp.sqrt(1e-7 + var) + mu

    # ---------------- decode ----------------
    d0 = (mm(z, w("di_w", 0, LATENT))
          + mm(f_global, w("di_w", LATENT, LATENT + COND))
          + mm(f_local, w("di_w", LATENT + COND, LATENT + 2 * COND))
          + b("di_b"))
    d1 = jnp.tanh(mm(d0, w("d1_w")) + b("d1_b"))
    d2 = jnp.tanh(mm(d1, w("d2_w")) + b("d2_b"))                         # (B, WINDOW)
    mv = mm(d2, w("mxvx_w")) + b("mxvx_b")                               # (B, 2*WINDOW)
    mu_x = mv[:, 0:WINDOW]
    var_x = softplus(mv[:, WINDOW:2 * WINDOW])
    rec_x = eps_x * jnp.sqrt(1e-7 + var_x) + mu_x

    # ---------------- loss (loss_type == 'C') ----------------
    inv_var_x = pl.reciprocal(var_x, approx=True)
    recon_b = 0.5 * jnp.mean(y * (jnp.log(var_x) + (x - mu_x) ** 2 * inv_var_x),
                             axis=1, keepdims=True)                      # (B, 1)
    recon = jnp.mean(recon_b, axis=0, keepdims=True)                     # (1, 1)
    m = jnp.sum(y, axis=1, keepdims=True) * (1.0 / WINDOW)               # (B, 1)
    inv_var = pl.reciprocal(var, approx=True)
    kld_b = 0.5 * jnp.mean(m * z ** 2 - jnp.log(var) - (z - mu) ** 2 * inv_var,
                           axis=1, keepdims=True)
    kld = jnp.mean(kld_b, axis=0, keepdims=True)
    loss = recon + kld                                                   # (1, 1)

    # ---------------- single lane-dense packed output store ----------------
    pad = jnp.zeros((B, SLAB_W - _OUT_USED), f32)
    out_ref[...] = jnp.concatenate(
        [mu_x, var_x, rec_x, mu, var, jnp.broadcast_to(loss, (B, 1)), pad], axis=-1)


def _cvae_pallas(in_slab, w_slab, wqkv):
    vmem = pl.BlockSpec(memory_space=pltpu.MemorySpace.VMEM)
    return pl.pallas_call(
        _cvae_kernel,
        out_shape=jax.ShapeDtypeStruct((B, SLAB_W), jnp.float32),
        in_specs=[vmem, vmem, vmem],
        out_specs=vmem,
    )(in_slab, w_slab, wqkv)


@jax.jit
def cvae_forward(x, y, eps_z, eps_x, params):
    """x: (B, 1, WINDOW); y: (B, WINDOW). Returns [mu_x, var_x, rec_x, mu, var, loss]."""
    w_slab, wqkv = params
    x2d = x[:, 0, :].astype(jnp.float32)

    # torch.fft.rfft based conditioning features (glue; no Pallas FFT equivalent)
    fg_c = jnp.fft.rfft(x2d[:, :-1], axis=-1)                                 # (B, W/2) complex
    fg_feat = jnp.concatenate([fg_c.real, fg_c.imag], axis=-1).astype(jnp.float32)  # (B, W)

    x_l = x2d.at[:, -1].set(0.0)                                              # x_l[..., -1] = 0
    patches = jnp.stack(
        [x_l[:, j * STRIDE:j * STRIDE + KSIZE] for j in range(NPATCH)], axis=1)  # == nn.Unfold
    fl_c = jnp.fft.rfft(patches, axis=-1)                                     # (B, L, K/2+1)
    fl_feat = jnp.concatenate([fl_c.real, fl_c.imag], axis=-1)
    fl_feat = fl_feat.reshape(BL, KSIZE + 2).astype(jnp.float32)              # (B*L, K+2)

    # pack all kernel inputs into one (B + B*L, 128) slab -> a single input DMA
    main = jnp.concatenate(
        [x2d, fg_feat, y.astype(jnp.float32),
         eps_x.astype(jnp.float32), eps_z.astype(jnp.float32)], axis=-1)      # (B, 4W+LATENT)
    main = jnp.pad(main, ((0, 0), (0, SLAB_W - main.shape[-1])))
    flp = jnp.pad(fl_feat, ((0, 0), (0, SLAB_W - fl_feat.shape[-1])))
    in_slab = jnp.concatenate([main, flp], axis=0)                            # (B+B*L, 128)

    out = _cvae_pallas(in_slab, w_slab, wqkv)                                 # (B, 128)

    mu_x = out[:, 0:WINDOW]
    var_x = out[:, WINDOW:2 * WINDOW]
    rec_x = out[:, 2 * WINDOW:3 * WINDOW]
    mu = out[:, 3 * WINDOW:3 * WINDOW + LATENT]
    var = out[:, 3 * WINDOW + LATENT:3 * WINDOW + 2 * LATENT]
    loss = out[0, 3 * WINDOW + 2 * LATENT]

    # restore PyTorch shapes: (B, 1, W) for the x-space stats
    return (mu_x[:, None, :], var_x[:, None, :], rec_x[:, None, :], mu, var, loss)


def init_params(key):
    """Deterministic PyTorch-Linear-like init, packed into (slab, fused qkv weight)."""
    keys = iter(jax.random.split(key, 64))

    def lin(fan_in, fan_out, bias=True):
        bound = 1.0 / math.sqrt(fan_in)
        wgt = jax.random.uniform(next(keys), (fan_in, fan_out), jnp.float32, -bound, bound)
        if bias:
            bb = jax.random.uniform(next(keys), (1, fan_out), jnp.float32, -bound, bound)
            return wgt, bb
        return wgt, None

    p = {}
    p["eg_w"], p["eg_b"] = lin(WINDOW, COND)                    # emb_global
    p["el_w"], p["el_b"] = lin(KSIZE + 2, D_MODEL)              # emb_local
    wq, _ = lin(D_MODEL, N_HEAD * D_K, bias=False)              # attn w_qs
    wk, _ = lin(D_MODEL, N_HEAD * D_K, bias=False)              # attn w_ks
    wv, _ = lin(D_MODEL, N_HEAD * D_V, bias=False)              # attn w_vs
    p["fc_w"], _ = lin(N_HEAD * D_V, D_MODEL, bias=False)       # attn fc
    p["ln1_g"] = jnp.ones((1, D_MODEL), jnp.float32)
    p["ln1_b"] = jnp.zeros((1, D_MODEL), jnp.float32)
    p["f1_w"], p["f1_b"] = lin(D_MODEL, D_INNER)                # ffn w1
    p["f2_w"], p["f2_b"] = lin(D_INNER, D_MODEL)                # ffn w2
    p["ln2_g"] = jnp.ones((1, D_MODEL), jnp.float32)
    p["ln2_b"] = jnp.zeros((1, D_MODEL), jnp.float32)
    p["ol_w"], p["ol_b"] = lin(D_MODEL, COND)                   # out_linear
    p["e1_w"], p["e1_b"] = lin(WINDOW + 2 * COND, HIDDEN)       # encoder layer 1
    p["e2_w"], p["e2_b"] = lin(HIDDEN, HIDDEN)                  # encoder layer 2
    fmu_w, fmu_b = lin(HIDDEN, LATENT)                          # fc_mu
    fva_w, fva_b = lin(HIDDEN, LATENT)                          # fc_var
    p["di_w"], p["di_b"] = lin(LATENT + 2 * COND, HIDDEN)       # decoder_input
    p["d1_w"], p["d1_b"] = lin(HIDDEN, HIDDEN)                  # decoder layer 1
    p["d2_w"], p["d2_b"] = lin(HIDDEN, WINDOW)                  # decoder layer 2
    mx_w, mx_b = lin(WINDOW, WINDOW)                            # fc_mu_x
    vx_w, vx_b = lin(WINDOW, WINDOW)                            # fc_var_x

    # fused sibling projections
    p["fmuva_w"] = jnp.concatenate([fmu_w, fva_w], axis=1)
    p["fmuva_b"] = jnp.concatenate([fmu_b, fva_b], axis=1)
    p["mxvx_w"] = jnp.concatenate([mx_w, vx_w], axis=1)
    p["mxvx_b"] = jnp.concatenate([mx_b, vx_b], axis=1)
    # fused q/k/v weight with the 1/sqrt(d_k) attention scale folded into q
    wqkv = jnp.concatenate([wq * (1.0 / math.sqrt(D_K)), wk, wv], axis=1)   # (D_MODEL, 3*H*Dk)

    # pack everything into one lane-dense (rows, 128) slab
    slab = np.zeros((SLAB_ROWS, SLAB_W), np.float32)
    for name, (r0, nr, nc) in _OFF.items():
        slab[r0:r0 + nr, :nc] = np.asarray(p[name], np.float32).reshape(nr, nc)
    return jnp.asarray(slab), wqkv


if __name__ == "__main__":
    key = jax.random.PRNGKey(0)
    kx, ky, kz, kxx, kp = jax.random.split(key, 5)
    x = jax.random.normal(kx, (B, 1, WINDOW), jnp.float32)
    y = (jax.random.uniform(ky, (B, WINDOW)) > 0.2).astype(jnp.float32)
    eps_z = jax.random.normal(kz, (B, LATENT), jnp.float32)    # torch.randn_like(std) for z
    eps_x = jax.random.normal(kxx, (B, WINDOW), jnp.float32)   # torch.randn_like(std) for rec_x
    params = init_params(kp)

    outs = cvae_forward(x, y, eps_z, eps_x, params)
    jax.block_until_ready(outs)
    print("KERNEL_OK")
</pallas_src>

<mosaic_0001>
module attributes {stable_mosaic.version = 11 : i64} {
  func.func @_cvae_kernel(%arg0: memref<8x128xf32, #tpu.memory_space<vmem>>, %arg1: memref<728x128xf32, #tpu.memory_space<vmem>>, %arg2: memref<32x192xf32, #tpu.memory_space<vmem>>, %arg3: memref<2x128xf32, #tpu.memory_space<vmem>>) attributes {dimension_semantics = [], scalar_prefetch = 0 : i64, scratch_operands = 0 : i64, tpu.core_type = #tpu.core_type<tc>} {
    %c0 = arith.constant 0 : index
    %c0_0 = arith.constant 0 : index
    %0 = vector.load %arg0[%c0, %c0_0] : memref<8x128xf32, #tpu.memory_space<vmem>>, vector<2x128xf32>
    %1 = vector.extract_strided_slice %0 {offsets = [0, 0], sizes = [2, 16], strides = [1, 1]} : vector<2x128xf32> to vector<2x16xf32>
    %2 = vector.extract_strided_slice %0 {offsets = [0, 16], sizes = [2, 16], strides = [1, 1]} : vector<2x128xf32> to vector<2x16xf32>
    %3 = vector.extract_strided_slice %0 {offsets = [0, 32], sizes = [2, 16], strides = [1, 1]} : vector<2x128xf32> to vector<2x16xf32>
    %4 = vector.extract_strided_slice %0 {offsets = [0, 48], sizes = [2, 16], strides = [1, 1]} : vector<2x128xf32> to vector<2x16xf32>
    %5 = vector.extract_strided_slice %0 {offsets = [0, 64], sizes = [2, 8], strides = [1, 1]} : vector<2x128xf32> to vector<2x8xf32>
    %c2 = arith.constant 2 : index
    %c0_1 = arith.constant 0 : index
    %6 = vector.load %arg0[%c2, %c0_1] : memref<8x128xf32, #tpu.memory_space<vmem>>, vector<6x10xf32>
    %c0_2 = arith.constant 0 : index
    %c0_3 = arith.constant 0 : index
    %7 = vector.load %arg1[%c0_2, %c0_3] : memref<728x128xf32, #tpu.memory_space<vmem>>, vector<16x8xf32>
    %cst = arith.constant dense<0.000000e+00> : vector<2x8xf32>
    %8 = tpu.matmul %2, %7, %cst {dimension_numbers = #tpu.dot_dimension_numbers<[1], [0], [0], [1], [0, 0, 1, 1], [], []>} : vector<2x16xf32>, vector<16x8xf32>, vector<2x8xf32> -> vector<2x8xf32>
    %c712 = arith.constant 712 : index
    %c0_4 = arith.constant 0 : index
    %9 = vector.load %arg1[%c712, %c0_4] : memref<728x128xf32, #tpu.memory_space<vmem>>, vector<1x8xf32>
    %10 = vector.broadcast %9 : vector<1x8xf32> to vector<2x8xf32>
    %11 = arith.addf %8, %10 : vector<2x8xf32>
    %12 = math.tanh %11 : vector<2x8xf32>
    %c16 = arith.constant 16 : index
    %c0_5 = arith.constant 0 : index
    %13 = vector.load %arg1[%c16, %c0_5] : memref<728x128xf32, #tpu.memory_space<vmem>>, vector<10x32xf32>
    %cst_6 = arith.constant dense<0.000000e+00> : vector<6x32xf32>
    %14 = tpu.matmul %6, %13, %cst_6 {dimension_numbers = #tpu.dot_dimension_numbers<[1], [0], [0], [1], [0, 0, 1, 1], [], []>} : vector<6x10xf32>, vector<10x32xf32>, vector<6x32xf32> -> vector<6x32xf32>
    %c713 = arith.constant 713 : index
    %c0_7 = arith.constant 0 : index
    %15 = vector.load %arg1[%c713, %c0_7] : memref<728x128xf32, #tpu.memory_space<vmem>>, vector<1x32xf32>
    %16 = vector.broadcast %15 : vector<1x32xf32> to vector<6x32xf32>
    %17 = arith.addf %14, %16 : vector<6x32xf32>
    %18 = math.tanh %17 : vector<6x32xf32>
    %c0_8 = arith.constant 0 : index
    %c0_9 = arith.constant 0 : index
    %19 = vector.load %arg2[%c0_8, %c0_9] : memref<32x192xf32, #tpu.memory_space<vmem>>, vector<32x192xf32>
    %cst_10 = arith.constant dense<0.000000e+00> : vector<6x192xf32>
    %20 = tpu.matmul %18, %19, %cst_10 {dimension_numbers = #tpu.dot_dimension_numbers<[1], [0], [0], [1], [0, 0, 1, 1], [], []>} : vector<6x32xf32>, vector<32x192xf32>, vector<6x192xf32> -> vector<6x192xf32>
    %21 = vector.extract_strided_slice %20 {offsets = [0, 0], sizes = [6, 64], strides = [1, 1]} : vector<6x192xf32> to vector<6x64xf32>
    %22 = vector.extract_strided_slice %20 {offsets = [0, 64], sizes = [6, 64], strides = [1, 1]} : vector<6x192xf32> to vector<6x64xf32>
    %23 = vector.extract_strided_slice %20 {offsets = [0, 128], sizes = [6, 64], strides = [1, 1]} : vector<6x192xf32> to vector<6x64xf32>
    %24 = tpu.iota {dimensions = array<i32: 0>} : vector<6x6xi32>
    %25 = tpu.iota {dimensions = array<i32: 1>} : vector<6x6xi32>
    %c0_i32 = arith.constant 0 : i32
    %26 = vector.broadcast %c0_i32 : i32 to vector<6x6xi32>
    %27 = arith.cmpi sge, %24, %26 : vector<6x6xi32>
    %c3_i32 = arith.constant 3 : i32
    %28 = vector.broadcast %c3_i32 : i32 to vector<6x6xi32>
    %29 = arith.cmpi slt, %24, %28 : vector<6x6xi32>
    %30 = arith.andi %27, %29 : vector<6x6xi1>
    %c0_i32_11 = arith.constant 0 : i32
    %31 = vector.broadcast %c0_i32_11 : i32 to vector<6x6xi32>
    %32 = arith.cmpi sge, %25, %31 : vector<6x6xi32>
    %c3_i32_12 = arith.constant 3 : i32
    %33 = vector.broadcast %c3_i32_12 : i32 to vector<6x6xi32>
    %34 = arith.cmpi slt, %25, %33 : vector<6x6xi32>
    %35 = arith.andi %32, %34 : vector<6x6xi1>
    %36 = arith.andi %30, %35 : vector<6x6xi1>
    %c3_i32_13 = arith.constant 3 : i32
    %37 = vector.broadcast %c3_i32_13 : i32 to vector<6x6xi32>
    %38 = arith.cmpi sge, %24, %37 : vector<6x6xi32>
    %c6_i32 = arith.constant 6 : i32
    %39 = vector.broadcast %c6_i32 : i32 to vector<6x6xi32>
    %40 = arith.cmpi slt, %24, %39 : vector<6x6xi32>
    %41 = arith.andi %38, %40 : vector<6x6xi1>
    %c3_i32_14 = arith.constant 3 : i32
    %42 = vector.broadcast %c3_i32_14 : i32 to vector<6x6xi32>
    %43 = arith.cmpi sge, %25, %42 : vector<6x6xi32>
    %c6_i32_15 = arith.constant 6 : i32
    %44 = vector.broadcast %c6_i32_15 : i32 to vector<6x6xi32>
    %45 = arith.cmpi slt, %25, %44 : vector<6x6xi32>
    %46 = arith.andi %43, %45 : vector<6x6xi1>
    %47 = arith.andi %41, %46 : vector<6x6xi1>
    %48 = arith.ori %36, %47 : vector<6x6xi1>
    %cst_16 = arith.constant 0.000000e+00 : f32
    %cst_17 = arith.constant -1.000000e+30 : f32
    %49 = vector.broadcast %cst_16 : f32 to vector<6x6xf32>
    %50 = vector.broadcast %cst_17 : f32 to vector<6x6xf32>
    %51 = arith.select %48, %49, %50 : vector<6x6xi1>, vector<6x6xf32>
    %52 = vector.extract_strided_slice %21 {offsets = [0, 0], sizes = [6, 16], strides = [1, 1]} : vector<6x64xf32> to vector<6x16xf32>
    %53 = vector.extract_strided_slice %22 {offsets = [0, 0], sizes = [6, 16], strides = [1, 1]} : vector<6x64xf32> to vector<6x16xf32>
    %54 = vector.extract_strided_slice %23 {offsets = [0, 0], sizes = [6, 16], strides = [1, 1]} : vector<6x64xf32> to vector<6x16xf32>
    %cst_18 = arith.constant dense<0.000000e+00> : vector<6x6xf32>
    %55 = tpu.matmul %52, %53, %cst_18 {dimension_numbers = #tpu.dot_dimension_numbers<[1], [1], [0], [0], [0, 0, 1, 0], [], []>} : vector<6x16xf32>, vector<6x16xf32>, vector<6x6xf32> -> vector<6x6xf32>
    %56 = arith.addf %55, %51 : vector<6x6xf32>
    %cst_19 = arith.constant dense<0xFF800000> : vector<6xf32>
    %57 = vector.multi_reduction <maximumf>, %56, %cst_19 [1] : vector<6x6xf32> to vector<6xf32>
    %58 = vector.shape_cast %57 : vector<6xf32> to vector<6x1xf32>
    %59 = vector.broadcast %58 : vector<6x1xf32> to vector<6x6xf32>
    %60 = arith.subf %56, %59 : vector<6x6xf32>
    %61 = math.exp %60 : vector<6x6xf32>
    %cst_20 = arith.constant dense<0.000000e+00> : vector<6xf32>
    %62 = vector.multi_reduction <add>, %61, %cst_20 [1] : vector<6x6xf32> to vector<6xf32>
    %63 = vector.shape_cast %62 : vector<6xf32> to vector<6x1xf32>
    %64 = tpu.reciprocal %63 {approx = true} : vector<6x1xf32> -> vector<6x1xf32>
    %65 = vector.broadcast %64 : vector<6x1xf32> to vector<6x6xf32>
    %66 = arith.mulf %61, %65 : vector<6x6xf32>
    %cst_21 = arith.constant dense<0.000000e+00> : vector<6x16xf32>
    %67 = tpu.matmul %66, %54, %cst_21 {dimension_numbers = #tpu.dot_dimension_numbers<[1], [0], [0], [1], [0, 0, 1, 1], [], []>} : vector<6x6xf32>, vector<6x16xf32>, vector<6x16xf32> -> vector<6x16xf32>
    %68 = vector.extract_strided_slice %21 {offsets = [0, 16], sizes = [6, 16], strides = [1, 1]} : vector<6x64xf32> to vector<6x16xf32>
    %69 = vector.extract_strided_slice %22 {offsets = [0, 16], sizes = [6, 16], strides = [1, 1]} : vector<6x64xf32> to vector<6x16xf32>
    %70 = vector.extract_strided_slice %23 {offsets = [0, 16], sizes = [6, 16], strides = [1, 1]} : vector<6x64xf32> to vector<6x16xf32>
    %cst_22 = arith.constant dense<0.000000e+00> : vector<6x6xf32>
    %71 = tpu.matmul %68, %69, %cst_22 {dimension_numbers = #tpu.dot_dimension_numbers<[1], [1], [0], [0], [0, 0, 1, 0], [], []>} : vector<6x16xf32>, vector<6x16xf32>, vector<6x6xf32> -> vector<6x6xf32>
    %72 = arith.addf %71, %51 : vector<6x6xf32>
    %cst_23 = arith.constant dense<0xFF800000> : vector<6xf32>
    %73 = vector.multi_reduction <maximumf>, %72, %cst_23 [1] : vector<6x6xf32> to vector<6xf32>
    %74 = vector.shape_cast %73 : vector<6xf32> to vector<6x1xf32>
    %75 = vector.broadcast %74 : vector<6x1xf32> to vector<6x6xf32>
    %76 = arith.subf %72, %75 : vector<6x6xf32>
    %77 = math.exp %76 : vector<6x6xf32>
    %cst_24 = arith.constant dense<0.000000e+00> : vector<6xf32>
    %78 = vector.multi_reduction <add>, %77, %cst_24 [1] : vector<6x6xf32> to vector<6xf32>
    %79 = vector.shape_cast %78 : vector<6xf32> to vector<6x1xf32>
    %80 = tpu.reciprocal %79 {approx = true} : vector<6x1xf32> -> vector<6x1xf32>
    %81 = vector.broadcast %80 : vector<6x1xf32> to vector<6x6xf32>
    %82 = arith.mulf %77, %81 : vector<6x6xf32>
    %cst_25 = arith.constant dense<0.000000e+00> : vector<6x16xf32>
    %83 = tpu.matmul %82, %70, %cst_25 {dimension_numbers = #tpu.dot_dimension_numbers<[1], [0], [0], [1], [0, 0, 1, 1], [], []>} : vector<6x6xf32>, vector<6x16xf32>, vector<6x16xf32> -> vector<6x16xf32>
    %84 = vector.extract_strided_slice %21 {offsets = [0, 32], sizes = [6, 16], strides = [1, 1]} : vector<6x64xf32> to vector<6x16xf32>
    %85 = vector.extract_strided_slice %22 {offsets = [0, 32], sizes = [6, 16], strides = [1, 1]} : vector<6x64xf32> to vector<6x16xf32>
    %86 = vector.extract_strided_slice %23 {offsets = [0, 32], sizes = [6, 16], strides = [1, 1]} : vector<6x64xf32> to vector<6x16xf32>
    %cst_26 = arith.constant dense<0.000000e+00> : vector<6x6xf32>
    %87 = tpu.matmul %84, %85, %cst_26 {dimension_numbers = #tpu.dot_dimension_numbers<[1], [1], [0], [0], [0, 0, 1, 0], [], []>} : vector<6x16xf32>, vector<6x16xf32>, vector<6x6xf32> -> vector<6x6xf32>
    %88 = arith.addf %87, %51 : vector<6x6xf32>
    %cst_27 = arith.constant dense<0xFF800000> : vector<6xf32>
    %89 = vector.multi_reduction <maximumf>, %88, %cst_27 [1] : vector<6x6xf32> to vector<6xf32>
    %90 = vector.shape_cast %89 : vector<6xf32> to vector<6x1xf32>
    %91 = vector.broadcast %90 : vector<6x1xf32> to vector<6x6xf32>
    %92 = arith.subf %88, %91 : vector<6x6xf32>
    %93 = math.exp %92 : vector<6x6xf32>
    %cst_28 = arith.constant dense<0.000000e+00> : vector<6xf32>
    %94 = vector.multi_reduction <add>, %93, %cst_28 [1] : vector<6x6xf32> to vector<6xf32>
    %95 = vector.shape_cast %94 : vector<6xf32> to vector<6x1xf32>
    %96 = tpu.reciprocal %95 {approx = true} : vector<6x1xf32> -> vector<6x1xf32>
    %97 = vector.broadcast %96 : vector<6x1xf32> to vector<6x6xf32>
    %98 = arith.mulf %93, %97 : vector<6x6xf32>
    %cst_29 = arith.constant dense<0.000000e+00> : vector<6x16xf32>
    %99 = tpu.matmul %98, %86, %cst_29 {dimension_numbers = #tpu.dot_dimension_numbers<[1], [0], [0], [1], [0, 0, 1, 1], [], []>} : vector<6x6xf32>, vector<6x16xf32>, vector<6x16xf32> -> vector<6x16xf32>
    %100 = vector.extract_strided_slice %21 {offsets = [0, 48], sizes = [6, 16], strides = [1, 1]} : vector<6x64xf32> to vector<6x16xf32>
    %101 = vector.extract_strided_slice %22 {offsets = [0, 48], sizes = [6, 16], strides = [1, 1]} : vector<6x64xf32> to vector<6x16xf32>
    %102 = vector.extract_strided_slice %23 {offsets = [0, 48], sizes = [6, 16], strides = [1, 1]} : vector<6x64xf32> to vector<6x16xf32>
    %cst_30 = arith.constant dense<0.000000e+00> : vector<6x6xf32>
    %103 = tpu.matmul %100, %101, %cst_30 {dimension_numbers = #tpu.dot_dimension_numbers<[1], [1], [0], [0], [0, 0, 1, 0], [], []>} : vector<6x16xf32>, vector<6x16xf32>, vector<6x6xf32> -> vector<6x6xf32>
    %104 = arith.addf %103, %51 : vector<6x6xf32>
    %cst_31 = arith.constant dense<0xFF800000> : vector<6xf32>
    %105 = vector.multi_reduction <maximumf>, %104, %cst_31 [1] : vector<6x6xf32> to vector<6xf32>
    %106 = vector.shape_cast %105 : vector<6xf32> to vector<6x1xf32>
    %107 = vector.broadcast %106 : vector<6x1xf32> to vector<6x6xf32>
    %108 = arith.subf %104, %107 : vector<6x6xf32>
    %109 = math.exp %108 : vector<6x6xf32>
    %cst_32 = arith.constant dense<0.000000e+00> : vector<6xf32>
    %110 = vector.multi_reduction <add>, %109, %cst_32 [1] : vector<6x6xf32> to vector<6xf32>
    %111 = vector.shape_cast %110 : vector<6xf32> to vector<6x1xf32>
    %112 = tpu.reciprocal %111 {approx = true} : vector<6x1xf32> -> vector<6x1xf32>
    %113 = vector.broadcast %112 : vector<6x1xf32> to vector<6x6xf32>
    %114 = arith.mulf %109, %113 : vector<6x6xf32>
    %cst_33 = arith.constant dense<0.000000e+00> : vector<6x16xf32>
    %115 = tpu.matmul %114, %102, %cst_33 {dimension_numbers = #tpu.dot_dimension_numbers<[1], [0], [0], [1], [0, 0, 1, 1], [], []>} : vector<6x6xf32>, vector<6x16xf32>, vector<6x16xf32> -> vector<6x16xf32>
    %116 = tpu.concatenate %67, %83, %99, %115 in 1 : vector<6x16xf32>, vector<6x16xf32>, vector<6x16xf32>, vector<6x16xf32> -> vector<6x64xf32>
    %c32 = arith.constant 32 : index
    %c0_34 = arith.constant 0 : index
    %117 = vector.load %arg1[%c32, %c0_34] : memref<728x128xf32, #tpu.memory_space<vmem>>, vector<64x32xf32>
    %cst_35 = arith.constant dense<0.000000e+00> : vector<6x32xf32>
    %118 = tpu.matmul %116, %117, %cst_35 {dimension_numbers = #tpu.dot_dimension_numbers<[1], [0], [0], [1], [0, 0, 1, 1], [], []>} : vector<6x64xf32>, vector<64x32xf32>, vector<6x32xf32> -> vector<6x32xf32>
    %119 = arith.addf %118, %18 : vector<6x32xf32>
    %c714 = arith.constant 714 : index
    %c0_36 = arith.constant 0 : index
    %120 = vector.load %arg1[%c714, %c0_36] : memref<728x128xf32, #tpu.memory_space<vmem>>, vector<1x32xf32>
    %c715 = arith.constant 715 : index
    %c0_37 = arith.constant 0 : index
    %121 = vector.load %arg1[%c715, %c0_37] : memref<728x128xf32, #tpu.memory_space<vmem>>, vector<1x32xf32>
    %cst_38 = arith.constant dense<0.000000e+00> : vector<6xf32>
    %122 = vector.multi_reduction <add>, %119, %cst_38 [1] : vector<6x32xf32> to vector<6xf32>
    %123 = vector.shape_cast %122 : vector<6xf32> to vector<6x1xf32>
    %cst_39 = arith.constant 3.200000e+01 : f32
    %124 = vector.broadcast %cst_39 : f32 to vector<6x1xf32>
    %125 = arith.divf %123, %124 : vector<6x1xf32>
    %126 = vector.broadcast %125 : vector<6x1xf32> to vector<6x32xf32>
    %127 = arith.subf %119, %126 : vector<6x32xf32>
    %128 = arith.mulf %127, %127 : vector<6x32xf32>
    %cst_40 = arith.constant dense<0.000000e+00> : vector<6xf32>
    %129 = vector.multi_reduction <add>, %128, %cst_40 [1] : vector<6x32xf32> to vector<6xf32>
    %130 = vector.shape_cast %129 : vector<6xf32> to vector<6x1xf32>
    %cst_41 = arith.constant 3.200000e+01 : f32
    %131 = vector.broadcast %cst_41 : f32 to vector<6x1xf32>
    %132 = arith.divf %130, %131 : vector<6x1xf32>
    %133 = vector.broadcast %125 : vector<6x1xf32> to vector<6x32xf32>
    %134 = arith.subf %119, %133 : vector<6x32xf32>
    %cst_42 = arith.constant 9.99999997E-7 : f32
    %135 = vector.broadcast %cst_42 : f32 to vector<6x1xf32>
    %136 = arith.addf %132, %135 : vector<6x1xf32>
    %137 = math.rsqrt %136 : vector<6x1xf32>
    %138 = vector.broadcast %137 : vector<6x1xf32> to vector<6x32xf32>
    %139 = arith.mulf %134, %138 : vector<6x32xf32>
    %140 = vector.broadcast %120 : vector<1x32xf32> to vector<6x32xf32>
    %141 = arith.mulf %139, %140 : vector<6x32xf32>
    %142 = vector.broadcast %121 : vector<1x32xf32> to vector<6x32xf32>
    %143 = arith.addf %141, %142 : vector<6x32xf32>
    %c96 = arith.constant 96 : index
    %c0_43 = arith.constant 0 : index
    %144 = vector.load %arg1[%c96, %c0_43] : memref<728x128xf32, #tpu.memory_space<vmem>>, vector<32x64xf32>
    %cst_44 = arith.constant dense<0.000000e+00> : vector<6x64xf32>
    %145 = tpu.matmul %143, %144, %cst_44 {dimension_numbers = #tpu.dot_dimension_numbers<[1], [0], [0], [1], [0, 0, 1, 1], [], []>} : vector<6x32xf32>, vector<32x64xf32>, vector<6x64xf32> -> vector<6x64xf32>
    %c716 = arith.constant 716 : index
    %c0_45 = arith.constant 0 : index
    %146 = vector.load %arg1[%c716, %c0_45] : memref<728x128xf32, #tpu.memory_space<vmem>>, vector<1x64xf32>
    %147 = vector.broadcast %146 : vector<1x64xf32> to vector<6x64xf32>
    %148 = arith.addf %145, %147 : vector<6x64xf32>
    %cst_46 = arith.constant 0.000000e+00 : f32
    %149 = vector.broadcast %cst_46 : f32 to vector<6x64xf32>
    %150 = arith.maximumf %148, %149 : vector<6x64xf32>
    %c128 = arith.constant 128 : index
    %c0_47 = arith.constant 0 : index
    %151 = vector.load %arg1[%c128, %c0_47] : memref<728x128xf32, #tpu.memory_space<vmem>>, vector<64x32xf32>
    %cst_48 = arith.constant dense<0.000000e+00> : vector<6x32xf32>
    %152 = tpu.matmul %150, %151, %cst_48 {dimension_numbers = #tpu.dot_dimension_numbers<[1], [0], [0], [1], [0, 0, 1, 1], [], []>} : vector<6x64xf32>, vector<64x32xf32>, vector<6x32xf32> -> vector<6x32xf32>
    %c717 = arith.constant 717 : index
    %c0_49 = arith.constant 0 : index
    %153 = vector.load %arg1[%c717, %c0_49] : memref<728x128xf32, #tpu.memory_space<vmem>>, vector<1x32xf32>
    %154 = vector.broadcast %153 : vector<1x32xf32> to vector<6x32xf32>
    %155 = arith.addf %152, %154 : vector<6x32xf32>
    %156 = arith.addf %155, %143 : vector<6x32xf32>
    %c718 = arith.constant 718 : index
    %c0_50 = arith.constant 0 : index
    %157 = vector.load %arg1[%c718, %c0_50] : memref<728x128xf32, #tpu.memory_space<vmem>>, vector<1x32xf32>
    %c719 = arith.constant 719 : index
    %c0_51 = arith.constant 0 : index
    %158 = vector.load %arg1[%c719, %c0_51] : memref<728x128xf32, #tpu.memory_space<vmem>>, vector<1x32xf32>
    %cst_52 = arith.constant dense<0.000000e+00> : vector<6xf32>
    %159 = vector.multi_reduction <add>, %156, %cst_52 [1] : vector<6x32xf32> to vector<6xf32>
    %160 = vector.shape_cast %159 : vector<6xf32> to vector<6x1xf32>
    %cst_53 = arith.constant 3.200000e+01 : f32
    %161 = vector.broadcast %cst_53 : f32 to vector<6x1xf32>
    %162 = arith.divf %160, %161 : vector<6x1xf32>
    %163 = vector.broadcast %162 : vector<6x1xf32> to vector<6x32xf32>
    %164 = arith.subf %156, %163 : vector<6x32xf32>
    %165 = arith.mulf %164, %164 : vector<6x32xf32>
    %cst_54 = arith.constant dense<0.000000e+00> : vector<6xf32>
    %166 = vector.multi_reduction <add>, %165, %cst_54 [1] : vector<6x32xf32> to vector<6xf32>
    %167 = vector.shape_cast %166 : vector<6xf32> to vector<6x1xf32>
    %cst_55 = arith.constant 3.200000e+01 : f32
    %168 = vector.broadcast %cst_55 : f32 to vector<6x1xf32>
    %169 = arith.divf %167, %168 : vector<6x1xf32>
    %170 = vector.broadcast %162 : vector<6x1xf32> to vector<6x32xf32>
    %171 = arith.subf %156, %170 : vector<6x32xf32>
    %cst_56 = arith.constant 9.99999997E-7 : f32
    %172 = vector.broadcast %cst_56 : f32 to vector<6x1xf32>
    %173 = arith.addf %169, %172 : vector<6x1xf32>
    %174 = math.rsqrt %173 : vector<6x1xf32>
    %175 = vector.broadcast %174 : vector<6x1xf32> to vector<6x32xf32>
    %176 = arith.mulf %171, %175 : vector<6x32xf32>
    %177 = vector.broadcast %157 : vector<1x32xf32> to vector<6x32xf32>
    %178 = arith.mulf %176, %177 : vector<6x32xf32>
    %179 = vector.broadcast %158 : vector<1x32xf32> to vector<6x32xf32>
    %180 = arith.addf %178, %179 : vector<6x32xf32>
    %181 = tpu.iota {dimensions = array<i32: 0>} : vector<2x6xi32>
    %182 = tpu.iota {dimensions = array<i32: 1>} : vector<2x6xi32>
    %c3_i32_57 = arith.constant 3 : i32
    %183 = vector.broadcast %c3_i32_57 : i32 to vector<2x6xi32>
    %184 = arith.muli %181, %183 : vector<2x6xi32>
    %c2_i32 = arith.constant 2 : i32
    %185 = vector.broadcast %c2_i32 : i32 to vector<2x6xi32>
    %186 = arith.addi %184, %185 : vector<2x6xi32>
    %187 = arith.cmpi eq, %182, %186 : vector<2x6xi32>
    %cst_58 = arith.constant 1.000000e+00 : f32
    %cst_59 = arith.constant 0.000000e+00 : f32
    %188 = vector.broadcast %cst_58 : f32 to vector<2x6xf32>
    %189 = vector.broadcast %cst_59 : f32 to vector<2x6xf32>
    %190 = arith.select %187, %188, %189 : vector<2x6xi1>, vector<2x6xf32>
    %cst_60 = arith.constant dense<0.000000e+00> : vector<2x32xf32>
    %191 = tpu.matmul %190, %180, %cst_60 {dimension_numbers = #tpu.dot_dimension_numbers<[1], [0], [0], [1], [0, 0, 1, 1], [], []>} : vector<2x6xf32>, vector<6x32xf32>, vector<2x32xf32> -> vector<2x32xf32>
    %c192 = arith.constant 192 : index
    %c0_61 = arith.constant 0 : index
    %192 = vector.load %arg1[%c192, %c0_61] : memref<728x128xf32, #tpu.memory_space<vmem>>, vector<32x8xf32>
    %cst_62 = arith.constant dense<0.000000e+00> : vector<2x8xf32>
    %193 = tpu.matmul %191, %192, %cst_62 {dimension_numbers = #tpu.dot_dimension_numbers<[1], [0], [0], [1], [0, 0, 1, 1], [], []>} : vector<2x32xf32>, vector<32x8xf32>, vector<2x8xf32> -> vector<2x8xf32>
    %c720 = arith.constant 720 : index
    %c0_63 = arith.constant 0 : index
    %194 = vector.load %arg1[%c720, %c0_63] : memref<728x128xf32, #tpu.memory_space<vmem>>, vector<1x8xf32>
    %195 = vector.broadcast %194 : vector<1x8xf32> to vector<2x8xf32>
    %196 = arith.addf %193, %195 : vector<2x8xf32>
    %197 = math.tanh %196 : vector<2x8xf32>
    %c224 = arith.constant 224 : index
    %c0_64 = arith.constant 0 : index
    %198 = vector.load %arg1[%c224, %c0_64] : memref<728x128xf32, #tpu.memory_space<vmem>>, vector<16x100xf32>
    %cst_65 = arith.constant dense<0.000000e+00> : vector<2x100xf32>
    %199 = tpu.matmul %1, %198, %cst_65 {dimension_numbers = #tpu.dot_dimension_numbers<[1], [0], [0], [1], [0, 0, 1, 1], [], []>} : vector<2x16xf32>, vector<16x100xf32>, vector<2x100xf32> -> vector<2x100xf32>
    %c240 = arith.constant 240 : index
    %c0_66 = arith.constant 0 : index
    %200 = vector.load %arg1[%c240, %c0_66] : memref<728x128xf32, #tpu.memory_space<vmem>>, vector<8x100xf32>
    %cst_67 = arith.constant dense<0.000000e+00> : vector<2x100xf32>
    %201 = tpu.matmul %12, %200, %cst_67 {dimension_numbers = #tpu.dot_dimension_numbers<[1], [0], [0], [1], [0, 0, 1, 1], [], []>} : vector<2x8xf32>, vector<8x100xf32>, vector<2x100xf32> -> vector<2x100xf32>
    %202 = arith.addf %199, %201 : vector<2x100xf32>
    %c248 = arith.constant 248 : index
    %c0_68 = arith.constant 0 : index
    %203 = vector.load %arg1[%c248, %c0_68] : memref<728x128xf32, #tpu.memory_space<vmem>>, vector<8x100xf32>
    %cst_69 = arith.constant dense<0.000000e+00> : vector<2x100xf32>
    %204 = tpu.matmul %197, %203, %cst_69 {dimension_numbers = #tpu.dot_dimension_numbers<[1], [0], [0], [1], [0, 0, 1, 1], [], []>} : vector<2x8xf32>, vector<8x100xf32>, vector<2x100xf32> -> vector<2x100xf32>
    %205 = arith.addf %202, %204 : vector<2x100xf32>
    %c721 = arith.constant 721 : index
    %c0_70 = arith.constant 0 : index
    %206 = vector.load %arg1[%c721, %c0_70] : memref<728x128xf32, #tpu.memory_space<vmem>>, vector<1x100xf32>
    %207 = vector.broadcast %206 : vector<1x100xf32> to vector<2x100xf32>
    %208 = arith.addf %205, %207 : vector<2x100xf32>
    %209 = math.tanh %208 : vector<2x100xf32>
    %c256 = arith.constant 256 : index
    %c0_71 = arith.constant 0 : index
    %210 = vector.load %arg1[%c256, %c0_71] : memref<728x128xf32, #tpu.memory_space<vmem>>, vector<100x100xf32>
    %cst_72 = arith.constant dense<0.000000e+00> : vector<2x100xf32>
    %211 = tpu.matmul %209, %210, %cst_72 {dimension_numbers = #tpu.dot_dimension_numbers<[1], [0], [0], [1], [0, 0, 1, 1], [], []>} : vector<2x100xf32>, vector<100x100xf32>, vector<2x100xf32> -> vector<2x100xf32>
    %c722 = arith.constant 722 : index
    %c0_73 = arith.constant 0 : index
    %212 = vector.load %arg1[%c722, %c0_73] : memref<728x128xf32, #tpu.memory_space<vmem>>, vector<1x100xf32>
    %213 = vector.broadcast %212 : vector<1x100xf32> to vector<2x100xf32>
    %214 = arith.addf %211, %213 : vector<2x100xf32>
    %215 = math.tanh %214 : vector<2x100xf32>
    %c360 = arith.constant 360 : index
    %c0_74 = arith.constant 0 : index
    %216 = vector.load %arg1[%c360, %c0_74] : memref<728x128xf32, #tpu.memory_space<vmem>>, vector<100x16xf32>
    %cst_75 = arith.constant dense<0.000000e+00> : vector<2x16xf32>
    %217 = tpu.matmul %215, %216, %cst_75 {dimension_numbers = #tpu.dot_dimension_numbers<[1], [0], [0], [1], [0, 0, 1, 1], [], []>} : vector<2x100xf32>, vector<100x16xf32>, vector<2x16xf32> -> vector<2x16xf32>
    %c723 = arith.constant 723 : index
    %c0_76 = arith.constant 0 : index
    %218 = vector.load %arg1[%c723, %c0_76] : memref<728x128xf32, #tpu.memory_space<vmem>>, vector<1x16xf32>
    %219 = vector.broadcast %218 : vector<1x16xf32> to vector<2x16xf32>
    %220 = arith.addf %217, %219 : vector<2x16xf32>
    %221 = vector.extract_strided_slice %220 {offsets = [0, 0], sizes = [2, 8], strides = [1, 1]} : vector<2x16xf32> to vector<2x8xf32>
    %222 = vector.extract_strided_slice %220 {offsets = [0, 8], sizes = [2, 8], strides = [1, 1]} : vector<2x16xf32> to vector<2x8xf32>
    %cst_77 = arith.constant 2.000000e+01 : f32
    %223 = vector.broadcast %cst_77 : f32 to vector<2x8xf32>
    %224 = arith.cmpf ogt, %222, %223 : vector<2x8xf32>
    %cst_78 = arith.constant 2.000000e+01 : f32
    %225 = vector.broadcast %cst_78 : f32 to vector<2x8xf32>
    %226 = arith.minimumf %222, %225 : vector<2x8xf32>
    %227 = math.exp %226 : vector<2x8xf32>
    %cst_79 = arith.constant 1.000000e+00 : f32
    %228 = vector.broadcast %cst_79 : f32 to vector<2x8xf32>
    %229 = arith.addf %228, %227 : vector<2x8xf32>
    %230 = math.log %229 : vector<2x8xf32>
    %231 = arith.select %224, %222, %230 : vector<2x8xi1>, vector<2x8xf32>
    %cst_80 = arith.constant 1.000000e-07 : f32
    %232 = vector.broadcast %cst_80 : f32 to vector<2x8xf32>
    %233 = arith.addf %232, %231 : vector<2x8xf32>
    %234 = math.sqrt %233 : vector<2x8xf32>
    %235 = arith.mulf %5, %234 : vector<2x8xf32>
    %236 = arith.addf %235, %221 : vector<2x8xf32>
    %c464 = arith.constant 464 : index
    %c0_81 = arith.constant 0 : index
    %237 = vector.load %arg1[%c464, %c0_81] : memref<728x128xf32, #tpu.memory_space<vmem>>, vector<8x100xf32>
    %cst_82 = arith.constant dense<0.000000e+00> : vector<2x100xf32>
    %238 = tpu.matmul %236, %237, %cst_82 {dimension_numbers = #tpu.dot_dimension_numbers<[1], [0], [0], [1], [0, 0, 1, 1], [], []>} : vector<2x8xf32>, vector<8x100xf32>, vector<2x100xf32> -> vector<2x100xf32>
    %c472 = arith.constant 472 : index
    %c0_83 = arith.constant 0 : index
    %239 = vector.load %arg1[%c472, %c0_83] : memref<728x128xf32, #tpu.memory_space<vmem>>, vector<8x100xf32>
    %cst_84 = arith.constant dense<0.000000e+00> : vector<2x100xf32>
    %240 = tpu.matmul %12, %239, %cst_84 {dimension_numbers = #tpu.dot_dimension_numbers<[1], [0], [0], [1], [0, 0, 1, 1], [], []>} : vector<2x8xf32>, vector<8x100xf32>, vector<2x100xf32> -> vector<2x100xf32>
    %241 = arith.addf %238, %240 : vector<2x100xf32>
    %c480 = arith.constant 480 : index
    %c0_85 = arith.constant 0 : index
    %242 = vector.load %arg1[%c480, %c0_85] : memref<728x128xf32, #tpu.memory_space<vmem>>, vector<8x100xf32>
    %cst_86 = arith.constant dense<0.000000e+00> : vector<2x100xf32>
    %243 = tpu.matmul %197, %242, %cst_86 {dimension_numbers = #tpu.dot_dimension_numbers<[1], [0], [0], [1], [0, 0, 1, 1], [], []>} : vector<2x8xf32>, vector<8x100xf32>, vector<2x100xf32> -> vector<2x100xf32>
    %244 = arith.addf %241, %243 : vector<2x100xf32>
    %c724 = arith.constant 724 : index
    %c0_87 = arith.constant 0 : index
    %245 = vector.load %arg1[%c724, %c0_87] : memref<728x128xf32, #tpu.memory_space<vmem>>, vector<1x100xf32>
    %246 = vector.broadcast %245 : vector<1x100xf32> to vector<2x100xf32>
    %247 = arith.addf %244, %246 : vector<2x100xf32>
    %c488 = arith.constant 488 : index
    %c0_88 = arith.constant 0 : index
    %248 = vector.load %arg1[%c488, %c0_88] : memref<728x128xf32, #tpu.memory_space<vmem>>, vector<100x100xf32>
    %cst_89 = arith.constant dense<0.000000e+00> : vector<2x100xf32>
    %249 = tpu.matmul %247, %248, %cst_89 {dimension_numbers = #tpu.dot_dimension_numbers<[1], [0], [0], [1], [0, 0, 1, 1], [], []>} : vector<2x100xf32>, vector<100x100xf32>, vector<2x100xf32> -> vector<2x100xf32>
    %c725 = arith.constant 725 : index
    %c0_90 = arith.constant 0 : index
    %250 = vector.load %arg1[%c725, %c0_90] : memref<728x128xf32, #tpu.memory_space<vmem>>, vector<1x100xf32>
    %251 = vector.broadcast %250 : vector<1x100xf32> to vector<2x100xf32>
    %252 = arith.addf %249, %251 : vector<2x100xf32>
    %253 = math.tanh %252 : vector<2x100xf32>
    %c592 = arith.constant 592 : index
    %c0_91 = arith.constant 0 : index
    %254 = vector.load %arg1[%c592, %c0_91] : memref<728x128xf32, #tpu.memory_space<vmem>>, vector<100x16xf32>
    %cst_92 = arith.constant dense<0.000000e+00> : vector<2x16xf32>
    %255 = tpu.matmul %253, %254, %cst_92 {dimension_numbers = #tpu.dot_dimension_numbers<[1], [0], [0], [1], [0, 0, 1, 1], [], []>} : vector<2x100xf32>, vector<100x16xf32>, vector<2x16xf32> -> vector<2x16xf32>
    %c726 = arith.constant 726 : index
    %c0_93 = arith.constant 0 : index
    %256 = vector.load %arg1[%c726, %c0_93] : memref<728x128xf32, #tpu.memory_space<vmem>>, vector<1x16xf32>
    %257 = vector.broadcast %256 : vector<1x16xf32> to vector<2x16xf32>
    %258 = arith.addf %255, %257 : vector<2x16xf32>
    %259 = math.tanh %258 : vector<2x16xf32>
    %c696 = arith.constant 696 : index
    %c0_94 = arith.constant 0 : index
    %260 = vector.load %arg1[%c696, %c0_94] : memref<728x128xf32, #tpu.memory_space<vmem>>, vector<16x32xf32>
    %cst_95 = arith.constant dense<0.000000e+00> : vector<2x32xf32>
    %261 = tpu.matmul %259, %260, %cst_95 {dimension_numbers = #tpu.dot_dimension_numbers<[1], [0], [0], [1], [0, 0, 1, 1], [], []>} : vector<2x16xf32>, vector<16x32xf32>, vector<2x32xf32> -> vector<2x32xf32>
    %c727 = arith.constant 727 : index
    %c0_96 = arith.constant 0 : index
    %262 = vector.load %arg1[%c727, %c0_96] : memref<728x128xf32, #tpu.memory_space<vmem>>, vector<1x32xf32>
    %263 = vector.broadcast %262 : vector<1x32xf32> to vector<2x32xf32>
    %264 = arith.addf %261, %263 : vector<2x32xf32>
    %265 = vector.extract_strided_slice %264 {offsets = [0, 0], sizes = [2, 16], strides = [1, 1]} : vector<2x32xf32> to vector<2x16xf32>
    %266 = vector.extract_strided_slice %264 {offsets = [0, 16], sizes = [2, 16], strides = [1, 1]} : vector<2x32xf32> to vector<2x16xf32>
    %cst_97 = arith.constant 2.000000e+01 : f32
    %267 = vector.broadcast %cst_97 : f32 to vector<2x16xf32>
    %268 = arith.cmpf ogt, %266, %267 : vector<2x16xf32>
    %cst_98 = arith.constant 2.000000e+01 : f32
    %269 = vector.broadcast %cst_98 : f32 to vector<2x16xf32>
    %270 = arith.minimumf %266, %269 : vector<2x16xf32>
    %271 = math.exp %270 : vector<2x16xf32>
    %cst_99 = arith.constant 1.000000e+00 : f32
    %272 = vector.broadcast %cst_99 : f32 to vector<2x16xf32>
    %273 = arith.addf %272, %271 : vector<2x16xf32>
    %274 = math.log %273 : vector<2x16xf32>
    %275 = arith.select %268, %266, %274 : vector<2x16xi1>, vector<2x16xf32>
    %cst_100 = arith.constant 1.000000e-07 : f32
    %276 = vector.broadcast %cst_100 : f32 to vector<2x16xf32>
    %277 = arith.addf %276, %275 : vector<2x16xf32>
    %278 = math.sqrt %277 : vector<2x16xf32>
    %279 = arith.mulf %4, %278 : vector<2x16xf32>
    %280 = arith.addf %279, %265 : vector<2x16xf32>
    %281 = tpu.reciprocal %275 {approx = true} : vector<2x16xf32> -> vector<2x16xf32>
    %282 = math.log %275 : vector<2x16xf32>
    %283 = arith.subf %1, %265 : vector<2x16xf32>
    %284 = arith.mulf %283, %283 : vector<2x16xf32>
    %285 = arith.mulf %284, %281 : vector<2x16xf32>
    %286 = arith.addf %282, %285 : vector<2x16xf32>
    %287 = arith.mulf %3, %286 : vector<2x16xf32>
    %cst_101 = arith.constant dense<0.000000e+00> : vector<2xf32>
    %288 = vector.multi_reduction <add>, %287, %cst_101 [1] : vector<2x16xf32> to vector<2xf32>
    %289 = vector.shape_cast %288 : vector<2xf32> to vector<2x1xf32>
    %cst_102 = arith.constant 1.600000e+01 : f32
    %290 = vector.broadcast %cst_102 : f32 to vector<2x1xf32>
    %291 = arith.divf %289, %290 : vector<2x1xf32>
    %cst_103 = arith.constant 5.000000e-01 : f32
    %292 = vector.broadcast %cst_103 : f32 to vector<2x1xf32>
    %293 = arith.mulf %292, %291 : vector<2x1xf32>
    %cst_104 = arith.constant dense<0.000000e+00> : vector<1xf32>
    %294 = vector.multi_reduction <add>, %293, %cst_104 [0] : vector<2x1xf32> to vector<1xf32>
    %295 = vector.shape_cast %294 : vector<1xf32> to vector<1x1xf32>
    %cst_105 = arith.constant 2.000000e+00 : f32
    %296 = vector.broadcast %cst_105 : f32 to vector<1x1xf32>
    %297 = arith.divf %295, %296 : vector<1x1xf32>
    %cst_106 = arith.constant dense<0.000000e+00> : vector<2xf32>
    %298 = vector.multi_reduction <add>, %3, %cst_106 [1] : vector<2x16xf32> to vector<2xf32>
    %299 = vector.shape_cast %298 : vector<2xf32> to vector<2x1xf32>
    %cst_107 = arith.constant 6.250000e-02 : f32
    %300 = vector.broadcast %cst_107 : f32 to vector<2x1xf32>
    %301 = arith.mulf %299, %300 : vector<2x1xf32>
    %302 = tpu.reciprocal %231 {approx = true} : vector<2x8xf32> -> vector<2x8xf32>
    %303 = arith.mulf %236, %236 : vector<2x8xf32>
    %304 = vector.broadcast %301 : vector<2x1xf32> to vector<2x8xf32>
    %305 = arith.mulf %304, %303 : vector<2x8xf32>
    %306 = math.log %231 : vector<2x8xf32>
    %307 = arith.subf %305, %306 : vector<2x8xf32>
    %308 = arith.subf %236, %221 : vector<2x8xf32>
    %309 = arith.mulf %308, %308 : vector<2x8xf32>
    %310 = arith.mulf %309, %302 : vector<2x8xf32>
    %311 = arith.subf %307, %310 : vector<2x8xf32>
    %cst_108 = arith.constant dense<0.000000e+00> : vector<2xf32>
    %312 = vector.multi_reduction <add>, %311, %cst_108 [1] : vector<2x8xf32> to vector<2xf32>
    %313 = vector.shape_cast %312 : vector<2xf32> to vector<2x1xf32>
    %cst_109 = arith.constant 8.000000e+00 : f32
    %314 = vector.broadcast %cst_109 : f32 to vector<2x1xf32>
    %315 = arith.divf %313, %314 : vector<2x1xf32>
    %cst_110 = arith.constant 5.000000e-01 : f32
    %316 = vector.broadcast %cst_110 : f32 to vector<2x1xf32>
    %317 = arith.mulf %316, %315 : vector<2x1xf32>
    %cst_111 = arith.constant dense<0.000000e+00> : vector<1xf32>
    %318 = vector.multi_reduction <add>, %317, %cst_111 [0] : vector<2x1xf32> to vector<1xf32>
    %319 = vector.shape_cast %318 : vector<1xf32> to vector<1x1xf32>
    %cst_112 = arith.constant 2.000000e+00 : f32
    %320 = vector.broadcast %cst_112 : f32 to vector<1x1xf32>
    %321 = arith.divf %319, %320 : vector<1x1xf32>
    %322 = arith.addf %297, %321 : vector<1x1xf32>
    %cst_113 = arith.constant 0.000000e+00 : f32
    %323 = vector.broadcast %cst_113 : f32 to vector<2x63xf32>
    %324 = vector.shape_cast %322 : vector<1x1xf32> to vector<1x1xf32>
    %325 = vector.broadcast %324 : vector<1x1xf32> to vector<2x1xf32>
    %326 = tpu.concatenate %265, %275, %280, %221, %231, %325, %323 in 1 : vector<2x16xf32>, vector<2x16xf32>, vector<2x16xf32>, vector<2x8xf32>, vector<2x8xf32>, vector<2x1xf32>, vector<2x63xf32> -> vector<2x128xf32>
    %c0_114 = arith.constant 0 : index
    %c0_115 = arith.constant 0 : index
    %327 = vector.load %arg3[%c0_114, %c0_115] : memref<2x128xf32, #tpu.memory_space<vmem>>, vector<2x128xf32>
    tpu.vector_store %arg3[%c0_114, %c0_115], %326 {strides = array<i32>} : memref<2x128xf32, #tpu.memory_space<vmem>>, vector<2x128xf32>,
    return
  }
}

</mosaic_0001>

<bundles_post_ra>
// kernel: cvae_forward.1
= control target key start
LH: loop header
LB: loop body
LE: loop exit
PB: predicated region body
PF: predicated region fallthrough
CT: control target
= control target key end

     0   :  { %8 = vsyncpa [#allocation3], 0  ;;  %s3076_s12 = smov [#allocation2]   ;;  %s3484_s0 = inlined_call_operand.vmem [shape: f32[8,128], index: 0, kind: input, shape index: {}]   ;;  %s3485_s1 = inlined_call_operand.hbm [shape: f32[728,128], index: 1, kind: input, shape index: {}]   ;;  %s3486_s2 = inlined_call_operand.vmem [shape: f32[32,192], index: 2, kind: input, shape index: {}]   ;;  %s3487_s3 = inlined_call_operand.vmem [shape: f32[2,128], index: 3, kind: output, shape index: {}]  }
   0x1   :  { %s16_s13 = sshll.u32 %s3076_s12, 4  ;;  %s17_s13 = int_to_ptr.vmem [resolvable:$true] %s16_s13 }
   0x2   :  { %s3062_s14 = scalar_lea.vmem %s17_s13, 11648  ;;  %p3067_p1 = scmp.lt.s32.totalorder %s17_s13, %s17_s13 }
   0x3   :  { %p3063_p0 = scmp.ne.s32.totalorder %s17_s13, %s3062_s14  ;;  %p3068_p2 = scmp.lt.s32.totalorder %s3062_s14, %s3062_s14 }
   0x5   :  { %p3069_p3 = por %p3068_p2, %p3067_p1 }
   0x7   :  { %p3070_p4 = pnand %p3069_p3, %p3063_p0 }
   0x9   :  { %3073 = shalt.err (!%p3070_p4)
}
   0xa   :  { %s3077_s15 = smov 128   ;;  %s3078_s16 = smov 8  }
   0xb   :  { %22 = dma.hbm_to_vmem [thread:$0]  %s3485_s1, 11648, %s17_s13, [#allocation3], %s3077_s15, %s3077_s15, %s3078_s16  }
   0xc   :  { %3074 = dma.done.wait [#allocation3], 11648  }
   0xd   :  { %3075 = vsyncadd [#allocation3], 4294955648  ;;  %v3079_v0 = vmov 0.0   ;;  %vm3080_vm0 = vmmov 0   ;;  %vm3488_vm1 = vcmask 1041408   ;;  %v114_v2 = vld [vmem:[#allocation2 + $0x10] sm:$0xff]  ;;  %v283_v32 = vlaneseq }
   0xe   :  { %2718 = vmatprep.subr.mxu1 %v3079_v0  ;;  %2722 = vmatprep.mubr.msk.f32.mxu1 %vm3080_vm0, %v3079_v0  ;;  %v115_v1 = vld [vmem:[#allocation2 + $0x18] sm:$0x3]  ;;  %v29_v3 = vld [vmem:[%s3484_s0 + $0x2] sm:$0x3f]  ;;  %vm121_vm2 = vcmask 80896   ;;  %s3081_s22 = smov 112  }
   0xf   :  { %2711 = vmatprep.subr.mxu0 %v3079_v0  ;;  %2715 = vmatprep.mubr.msk.f32.mxu0 %vm3080_vm0, %v3079_v0  ;;  %v3126_v4 = vld [vmem:[%s3484_s0] sm:$0x3]  ;;  %v31_v5 = vld [vmem:[#allocation2 + $0x8] sm:$0xff]  ;;  %v207_v7 = vld [vmem:[%s3486_s2 + $0x38] sm:$0xff]  ;;  %vm40_vm3 = vcmask 130048   ;;  %vm208_vm4 = vcmask 261120  }
  0x10   :  { %2719 = vmatpush3.msk.msra.mxu1 %vm3488_vm1, %v115_v1  ;;  %38 = vrot.lane.b32.xlu0 %v3126_v4, %s3081_s22  ;;  %v30_v6 = vld [vmem:[#allocation2] sm:$0xff]  ;;  %v206_v8 = vld [vmem:[%s3486_s2 + $0x30] sm:$0xff]  ;;  %v205_v10 = vld [vmem:[%s3486_s2 + $0x28] sm:$0xff]  ;;  %s3083_s12 = smov 64   ;;  %s3084_s13 = smov 32   ;;  %vm396_vm5 = vcmask 1045504  }
  0x11   :  { %2720 = vmatprep.subr.mxu1 %v3079_v0  ;;  %2712 = vmatpush3.msra.mxu0 %v31_v5  ;;  %v204_v11 = vld [vmem:[%s3486_s2 + $0x20] sm:$0xff]  ;;  %v203_v12 = vld [vmem:[%s3486_s2 + $0x18] sm:$0xff]  ;;  %v202_v13 = vld [vmem:[%s3486_s2 + $0x10] sm:$0xff]  ;;  %s3085_s14 = smov 96   ;;  %s3086_s15 = smov 16   ;;  %v3202_v33 = vshrl.u32 %v283_v32, 7 }
  0x12   :  { %2721 = vmatpush3.msra.mxu1 %v114_v2  ;;  %2713 = vmatprep.subr.mxu0 %v3079_v0  ;;  %v201_v14 = vld [vmem:[%s3486_s2 + $0x8] sm:$0xff]  ;;  %v200_v15 = vld [vmem:[%s3486_s2] sm:$0xff]  ;;  %s3082_s2 = smov 48   ;;  %s3087_s16 = smov 80   ;;  %v3204_v34 = vand.u32 127, %v283_v32  ;;  %vm380_vm1 = vcmask 46080  }
  0x13   :  { %2723 = vmatmul.mubr.msk.f32.vlgmr.msra.gmra.mxu1 %vm121_vm2, %v29_v3  ;;  %2725 = vmatprep.subr.mxu1 %v3079_v0  ;;  %v2532_v16 = vld [vmem:[#allocation2 + $0x2c9] ss:$0 sm:$0xff]  ;;  %vm294_vm6 = vcmp.ge.s32.totalorder %v3202_v33, 3  ;;  %vm295_vm7 = vcmp.lt.s32.totalorder %v3202_v33, 6  ;;  %vm288_vm10 = vcmp.lt.s32.totalorder %v3202_v33, 3  ;;  %v987_v32 = vld [vmem:[#allocation2 + $0x38] sm:$0xff] }
  0x14   :  { %2727 = vmatprep.mubr.msk.f32.mxu1 %vm3080_vm0, %v3079_v0  ;;  %2714 = vmatpush3.msra.mxu0 %v30_v6  ;;  %vm297_vm8 = vcmp.ge.s32.totalorder %v3204_v34, 3  ;;  %vm298_vm9 = vcmp.lt.s32.totalorder %v3204_v34, 6  ;;  %vm291_vm11 = vcmp.lt.s32.totalorder %v3204_v34, 3  ;;  %vm296_vm12 = vmand %vm294_vm6, %vm295_vm7  ;;  %v3088_v35 = vmov -1e+30   ;;  %s3089_s17 = smov 56  }
  0x15   :  { %236 = vmatprep.subr.mxu0 %v207_v7  ;;  %vm299_vm13 = vmand %vm297_vm8, %vm298_vm9  ;;  %vm392_vm6 = vcmask 48128   ;;  %vm992_vm7 = vcmask 523264   ;;  %vm1068_vm8 = vcmask 259072   ;;  %vm1454_vm9 = vcmask 64512  }
  0x16   :  { %vm293_vm14 = vmand %vm288_vm10, %vm291_vm11  ;;  %vm1700_vm11 = vcmask 818176  }
  0x17   :  { %vm300_vm15 = vmand %vm296_vm12, %vm299_vm13 }
  0x18   :  { %vm301_vm2 = vmor %vm293_vm14, %vm300_vm15  ;;  %vm2444_vm15 = vcmask 123904  }
  0x19   :  { %v302_v36 = vsel %vm301_vm2, 0.0, %v3088_v35  ;;  %v986_v35 = vld [vmem:[#allocation2 + $0x30] sm:$0xff] }
  0x82   :  { %v39_v9 = vpop.permute.xlu0 %38 }
  0x83   :  { %2716 = vmatmul.mubr.msk.f32.vlgmr.msra.gmra.mxu0 %vm40_vm3, %v39_v9 }
  0x84   :  { %237 = vmatpush1.msra.mxu0 %v206_v8  ;;  %276 = vmatprep.mubr.f32.mxu0 %v3079_v0 }
  0x85   :  { %238 = vmatprep.subr.mxu0 %v205_v10 }
  0x86   :  { %239 = vmatpush1.msra.mxu0 %v204_v11 }
  0x87   :  { %240 = vmatprep.subr.mxu0 %v203_v12 }
  0x88   :  { %241 = vmatpush1.msra.mxu0 %v202_v13 }
  0x89   :  { %242 = vmatprep.subr.mxu0 %v201_v14 }
  0x8a   :  { %243 = vmatpush1.msra.mxu0 %v200_v15 }
  0x8b   :  { %2735 = vmatprep.subr.mxu0 %v3079_v0 }
  0xd3   :  { %v195_v17 = vpop.f32.mrf.mxu1 }
  0xd4   :  { %v196_v18 = vadd.f32 %v2532_v16, %v195_v17 }
  0xd5   :  { %v2724_v19 = vpop.f32.mrf.mxu1 }
  0xd6   :  { %2999 = vtanh.f32 %v196_v18 }
  0xe3   :  { %v3162_v20 = vpop.eup %2999 }
  0xe4   :  { %2535 = vmatmul.mubr.msk.f32.vlgmr.msra.gmra.mxu0 %vm208_vm4, %v3162_v20 }
  0xe5   :  { %2737 = vmatprep.mubr.msk.f32.mxu0 %vm3080_vm0, %v3079_v0 }
 0x143   :  { %v3168_v21 = vpop.f32.mrf.mxu0 }
 0x145   :  { %v2717_v22 = vpop.f32.mrf.mxu0 }
 0x1a4   :  { %v278_v23 = vpop.f32.mrf.mxu0 }
 0x1a5   :  { %472 = vrot.lane.b32.xlu1 %v278_v23, %s3082_s2  ;;  %304 = vrot.lane.b32.xlu0 %v278_v23, %s3083_s12 }
 0x1a6   :  { %v3181_v26 = vpop.f32.mrf.mxu0 }
 0x1a9   :  { %470 = vrot.lane.b32.xlu1 %v278_v23, %s3081_s22  ;;  %638 = vrot.lane.b32.xlu0 %v278_v23, %s3084_s13 }
 0x1ad   :  { %636 = vrot.lane.b32.xlu1 %v278_v23, %s3085_s14  ;;  %804 = vrot.lane.b32.xlu0 %v278_v23, %s3086_s15 }
 0x1b1   :  { %802 = vrot.lane.b32.xlu1 %v278_v23, %s3087_s16 }
 0x217   :  { %v473_v24 = vpop.permute.xlu1 %472  ;;  %v305_v25 = vpop.permute.xlu0 %304 }
 0x218   :  { %2726 = vmatpush3.xpose.msk.msra.mxu1 %vm40_vm3, %v305_v25  ;;  %2736 = vmatpush3.xpose.msk.msra.mxu0 %vm40_vm3, %v473_v24 }
 0x219   :  { %2745 = vmatprep.subr.mxu0 %v3079_v0  ;;  %2730 = vmatprep.subr.mxu1 %v3079_v0 }
 0x21b   :  { %v471_v27 = vpop.permute.xlu1 %470  ;;  %2728 = vmatmul.mubr.msk.f32.vlgmr.msra.gmra.mxu1 %vm40_vm3, %v278_v23  ;;  %v639_v28 = vpop.permute.xlu0 %638 }
 0x21c   :  { %2731 = vmatpush3.msk.msra.mxu1 %vm396_vm5, %v3181_v26  ;;  %2738 = vmatmul.mubr.msk.f32.vlgmr.msra.gmra.mxu0 %vm40_vm3, %v471_v27 }
 0x21d   :  { %2746 = vmatpush3.xpose.msk.msra.mxu0 %vm40_vm3, %v639_v28  ;;  %2747 = vmatprep.mubr.msk.f32.mxu0 %vm3080_vm0, %v3079_v0  ;;  %v991_v28 = vld [vmem:[#allocation2 + $0x58] sm:$0xff] }
 0x21e   :  { %2755 = vmatprep.subr.mxu0 %v3079_v0  ;;  %2732 = vmatprep.mubr.msk.f32.mxu1 %vm3080_vm0, %v3079_v0 }
 0x21f   :  { %v637_v29 = vpop.permute.xlu1 %636  ;;  %v805_v30 = vpop.permute.xlu0 %804  ;;  %2740 = vmatprep.subr.mxu1 %v3079_v0 }
 0x220   :  { %2748 = vmatmul.mubr.msk.f32.vlgmr.msra.gmra.mxu0 %vm40_vm3, %v637_v29  ;;  %v990_v29 = vld [vmem:[#allocation2 + $0x50] sm:$0xff] }
 0x221   :  { %2756 = vmatpush3.xpose.msk.msra.mxu0 %vm40_vm3, %v805_v30  ;;  %2757 = vmatprep.mubr.msk.f32.mxu0 %vm3080_vm0, %v3079_v0  ;;  %v989_v30 = vld [vmem:[#allocation2 + $0x48] sm:$0xff] }
 0x222   :  { %2765 = vmatprep.subr.mxu0 %v3079_v0 }
 0x223   :  { %v803_v31 = vpop.permute.xlu1 %802 }
 0x224   :  { %2758 = vmatmul.mubr.msk.f32.vlgmr.msra.gmra.mxu0 %vm40_vm3, %v803_v31  ;;  %v988_v31 = vld [vmem:[#allocation2 + $0x40] sm:$0xff] }
 0x225   :  { %2781 = vmatprep.mubr.msk.f32.mxu0 %vm3080_vm0, %v3079_v0  ;;  %2766 = vmatpush3.msra.mxu0 %v991_v28  ;;  %v1453_v28 = vld [vmem:[#allocation2 + $0xf0] sm:$0xff] }
 0x226   :  { %2767 = vmatprep.subr.mxu0 %v3079_v0 }
 0x227   :  { %2768 = vmatpush3.msra.mxu0 %v990_v29 }
 0x228   :  { %2769 = vmatprep.subr.mxu0 %v3079_v0 }
 0x229   :  { %2770 = vmatpush3.msra.mxu0 %v989_v30 }
 0x22a   :  { %2771 = vmatprep.subr.mxu0 %v3079_v0 }
 0x22b   :  { %2772 = vmatpush3.msra.mxu0 %v988_v31 }
 0x22c   :  { %2773 = vmatprep.subr.mxu0 %v3079_v0 }
 0x22d   :  { %2774 = vmatpush3.msra.mxu0 %v987_v32 }
 0x22e   :  { %2775 = vmatprep.subr.mxu0 %v3079_v0 }
 0x22f   :  { %2776 = vmatpush3.msra.mxu0 %v986_v35 }
 0x230   :  { %2777 = vmatprep.subr.mxu0 %v3079_v0 }
 0x2db   :  { %v376_v37 = vpop.f32.mrf.mxu1 }
 0x2dc   :  { %v377_v38 = vadd.f32 %v376_v37, %v302_v36  ;;  %v544_v39 = vpop.f32.mrf.mxu0 }
 0x2dd   :  { %v545_v40 = vadd.f32 %v544_v39, %v302_v36  ;;  %v2729_v41 = vpop.f32.mrf.mxu1 }
 0x2de   :  { %v2739_v42 = vpop.f32.mrf.mxu0  ;;  %v381_v43 = vsel %vm380_vm1, %v377_v38, -inf }
 0x2df   :  { %382 = vmax.xlane.f32.xlu0 %v381_v43  ;;  %v548_v44 = vsel %vm380_vm1, %v545_v40, -inf }
 0x2e0   :  { %549 = vmax.xlane.f32.xlu1 %v548_v44  ;;  %v710_v45 = vpop.f32.mrf.mxu0 }
 0x2e1   :  { %v711_v46 = vadd.f32 %v710_v45, %v302_v36 }
 0x2e2   :  { %v2749_v47 = vpop.f32.mrf.mxu0 }
 0x2e3   :  { %v714_v48 = vsel %vm380_vm1, %v711_v46, -inf }
 0x2e4   :  { %715 = vmax.xlane.f32.xlu0 %v714_v48  ;;  %v876_v49 = vpop.f32.mrf.mxu0 }
 0x2e5   :  { %v877_v50 = vadd.f32 %v876_v49, %v302_v36  ;;  %v985_v36 = vld [vmem:[#allocation2 + $0x28] sm:$0xff] }
 0x2e6   :  { %v2759_v51 = vpop.f32.mrf.mxu0  ;;  %2778 = vmatpush3.msra.mxu0 %v985_v36 }
 0x2e7   :  { %v880_v52 = vsel %vm380_vm1, %v877_v50, -inf  ;;  %2779 = vmatprep.subr.mxu0 %v3079_v0 }
 0x2e8   :  { %881 = vmax.xlane.f32.xlu0 %v880_v52 }
 0x2f1   :  { %559 = vrot.lane.b32.xlu1 %v3181_v26, %s3081_s22 }
 0x368   :  { %v383_v53 = vpop.xlane.xlu0 %382 }
 0x369   :  { %v384_v54 = vsub.f32 %v377_v38, %v383_v53  ;;  %v550_v55 = vpop.xlane.xlu1 %549  ;;  %v984_v38 = vld [vmem:[#allocation2 + $0x20] sm:$0xff] }
 0x36a   :  { %v551_v56 = vsub.f32 %v545_v40, %v550_v55  ;;  %2780 = vmatpush3.msra.mxu0 %v984_v38 }
 0x36b   :  { %v385_v57 = vmul.f32 1.442695, %v384_v54  ;;  %2814 = vmatprep.subr.mxu0 %v3079_v0 }
 0x36c   :  { %v552_v58 = vmul.f32 1.442695, %v551_v56 }
 0x36d   :  { %3001 = vpow2.f32 %v385_v57  ;;  %v716_v59 = vpop.xlane.xlu0 %715  ;;  %v560_v11 = vpop.permute.xlu1 %559 }
 0x36e   :  { %3003 = vpow2.f32 %v552_v58  ;;  %v717_v60 = vsub.f32 %v711_v46, %v716_v59 }
 0x370   :  { %v718_v61 = vmul.f32 1.442695, %v717_v60 }
 0x371   :  { %v882_v62 = vpop.xlane.xlu0 %881 }
 0x372   :  { %3005 = vpow2.f32 %v718_v61  ;;  %v883_v63 = vsub.f32 %v877_v50, %v882_v62  ;;  %v1096_v61 = vld [vmem:[#allocation2 + $0x78] sm:$0xff]  ;;  %v1095_v62 = vld [vmem:[#allocation2 + $0x70] sm:$0xff] }
 0x374   :  { %v884_v1 = vmul.f32 1.442695, %v883_v63  ;;  %v1094_v63 = vld [vmem:[#allocation2 + $0x68] sm:$0xff] }
 0x376   :  { %3007 = vpow2.f32 %v884_v1 }
 0x37a   :  { %v3002_v2 = vpop.eup %3001 }
 0x37b   :  { %v3004_v3 = vpop.eup %3003  ;;  %v387_v5 = vsel %vm380_vm1, %v3002_v2, 0.0 }
 0x37c   :  { %388 = vadd.xlane.f32.xlu1 %v387_v5  ;;  %v554_v6 = vsel %vm380_vm1, %v3004_v3, 0.0 }
 0x37d   :  { %555 = vadd.xlane.f32.xlu0 %v554_v6  ;;  %v2553_v6 = vld [vmem:[#allocation2 + $0x2ca] ss:$0 sm:$0xff] }
 0x37f   :  { %v3006_v7 = vpop.eup %3005 }
 0x380   :  { %v720_v8 = vsel %vm380_vm1, %v3006_v7, 0.0 }
 0x381   :  { %721 = vadd.xlane.f32.xlu1 %v720_v8  ;;  %v2554_v8 = vld [vmem:[#allocation2 + $0x2cb] ss:$0 sm:$0xff] }
 0x383   :  { %v3008_v9 = vpop.eup %3007 }
 0x384   :  { %v886_v10 = vsel %vm380_vm1, %v3008_v9, 0.0  ;;  %vm982_vm1 = vcmask 392192  }
 0x385   :  { %887 = vadd.xlane.f32.xlu0 %v886_v10 }
 0x392   :  { %891 = vrot.lane.b32.xlu1 %v3181_v26, %s3087_s16 }
 0x39b   :  { %725 = vrot.lane.b32.xlu0 %v3181_v26, %s3085_s14 }
 0x405   :  { %v389_v12 = vpop.xlane.xlu1 %388 }
 0x406   :  { %3009 = vrcp.f32 %v389_v12  ;;  %v556_v13 = vpop.xlane.xlu0 %555  ;;  %v1182_v12 = vld [vmem:[#allocation2 + $0xb0] sm:$0xff] }
 0x407   :  { %3011 = vrcp.f32 %v556_v13  ;;  %v1181_v13 = vld [vmem:[#allocation2 + $0xa8] sm:$0xff] }
 0x40a   :  { %v722_v14 = vpop.xlane.xlu1 %721 }
 0x40b   :  { %3013 = vrcp.f32 %v722_v14  ;;  %v1180_v14 = vld [vmem:[#allocation2 + $0xa0] sm:$0xff] }
 0x40e   :  { %v888_v15 = vpop.xlane.xlu0 %887  ;;  %v892_v26 = vpop.permute.xlu1 %891 }
 0x40f   :  { %3015 = vrcp.f32 %v888_v15  ;;  %v1179_v15 = vld [vmem:[#allocation2 + $0x98] sm:$0xff] }
 0x412   :  { %v726_v23 = vpop.permute.xlu0 %725 }
 0x413   :  { %v3010_v16 = vpop.eup %3009 }
 0x414   :  { %v391_v17 = vmul.f32 %v3010_v16, %v3002_v2  ;;  %v3012_v18 = vpop.eup %3011  ;;  %v1178_v16 = vld [vmem:[#allocation2 + $0x90] sm:$0xff] }
 0x415   :  { %v558_v19 = vmul.f32 %v3012_v18, %v3004_v3  ;;  %v1176_v18 = vld [vmem:[#allocation2 + $0x80] sm:$0xff] }
 0x416   :  { %2733 = vmatmul.mubr.msk.f32.vlgmr.msra.gmra.mxu1 %vm392_vm6, %v391_v17  ;;  %v1177_v17 = vld [vmem:[#allocation2 + $0x88] sm:$0xff] }
 0x417   :  { %2741 = vmatpush3.msk.msra.mxu1 %vm396_vm5, %v560_v11  ;;  %2742 = vmatprep.mubr.msk.f32.mxu1 %vm3080_vm0, %v3079_v0  ;;  %v1183_v11 = vld [vmem:[#allocation2 + $0xb8] sm:$0xff] }
 0x418   :  { %2750 = vmatprep.subr.mxu1 %v3079_v0  ;;  %v3014_v22 = vpop.eup %3013 }
 0x419   :  { %v724_v24 = vmul.f32 %v3014_v22, %v3006_v7 }
 0x41a   :  { %2743 = vmatmul.mubr.msk.f32.vlgmr.msra.gmra.mxu1 %vm392_vm6, %v558_v19  ;;  %v2530_v19 = vld [vmem:[#allocation2 + $0x2c8] ss:$0 sm:$0xff] }
 0x41b   :  { %2751 = vmatpush3.msk.msra.mxu1 %vm396_vm5, %v726_v23  ;;  %2752 = vmatprep.mubr.msk.f32.mxu1 %vm3080_vm0, %v3079_v0  ;;  %v110_v22 = vadd.f32 %v2530_v19, %v3168_v21  ;;  %v2555_v23 = vld [vmem:[#allocation2 + $0x2cc] ss:$0 sm:$0xff]  ;;  %v2557_v21 = vld [vmem:[#allocation2 + $0x2cd] ss:$0 sm:$0xff]  ;;  %v1682_v19 = vld [vmem:[#allocation2 + $0x100] sm:$0xff] }
 0x41c   :  { %2760 = vmatprep.subr.mxu1 %v3079_v0  ;;  %v3016_v25 = vpop.eup %3015 }
 0x41d   :  { %v890_v27 = vmul.f32 %v3016_v25, %v3008_v9 }
 0x41e   :  { %2753 = vmatmul.mubr.msk.f32.vlgmr.msra.gmra.mxu1 %vm392_vm6, %v724_v24 }
 0x41f   :  { %2761 = vmatpush3.msk.msra.mxu1 %vm396_vm5, %v892_v26  ;;  %2762 = vmatprep.mubr.msk.f32.mxu1 %vm3080_vm0, %v3079_v0 }
 0x420   :  { %2784 = vmatprep.subr.mxu1 %v3079_v0 }
 0x422   :  { %2763 = vmatmul.mubr.msk.f32.vlgmr.msra.gmra.mxu1 %vm392_vm6, %v890_v27 }
 0x423   :  { %2792 = vmatprep.mubr.msk.f32.mxu1 %vm3080_vm0, %v3079_v0  ;;  %2785 = vmatpush3.msra.mxu1 %v1096_v61 }
 0x424   :  { %2786 = vmatprep.subr.mxu1 %v3079_v0 }
 0x425   :  { %2787 = vmatpush3.msra.mxu1 %v1095_v62  ;;  %v1600_v62 = vld [vmem:[#allocation2 + $0xf8] sm:$0xff] }
 0x426   :  { %2788 = vmatprep.subr.mxu1 %v3079_v0 }
 0x427   :  { %2789 = vmatpush3.msra.mxu1 %v1094_v63  ;;  %v1694_v63 = vld [vmem:[#allocation2 + $0x160] sm:$0xf] }
 0x428   :  { %2790 = vmatprep.subr.mxu1 %v3079_v0 }
 0x4d6   :  { %v466_v37 = vpop.f32.mrf.mxu1 }
 0x4d8   :  { %v2734_v39 = vpop.f32.mrf.mxu1 }
 0x4da   :  { %v632_v40 = vpop.f32.mrf.mxu1 }
 0x4db   :  { %969 = vrot.lane.b32.xlu1 %v632_v40, %s3086_s15 }
 0x4dc   :  { %v2744_v41 = vpop.f32.mrf.mxu1 }
 0x4de   :  { %v798_v42 = vpop.f32.mrf.mxu1 }
 0x4df   :  { %973 = vrot.lane.b32.xlu0 %v798_v42, %s3084_s13 }
 0x4e0   :  { %v2754_v43 = vpop.f32.mrf.mxu1 }
 0x4e2   :  { %v964_v44 = vpop.f32.mrf.mxu1 }
 0x4e3   :  { %977 = vrot.lane.b32.xlu1 %v964_v44, %s3082_s2 }
 0x4e4   :  { %v2764_v45 = vpop.f32.mrf.mxu1 }
 0x54d   :  { %v970_v46 = vpop.permute.xlu1 %969 }
 0x54e   :  { %v980_v48 = vsel %vm40_vm3, %v466_v37, %v970_v46 }
 0x551   :  { %v974_v47 = vpop.permute.xlu0 %973 }
 0x552   :  { %v981_v49 = vsel %vm208_vm4, %v980_v48, %v974_v47  ;;  %v1288_v47 = vmul.u32 3, %v3202_v33  ;;  %v1369_v33 = vld [vmem:[#allocation2 + $0xc8] sm:$0xff] }
 0x554   :  { %v1289_v48 = vadd.s32 2, %v1288_v47 }
 0x555   :  { %v978_v50 = vpop.permute.xlu1 %977 }
 0x556   :  { %v983_v51 = vsel %vm982_vm1, %v981_v49, %v978_v50  ;;  %v2559_v50 = vld [vmem:[#allocation2 + $0x2ce] ss:$0 sm:$0xff]  ;;  %vm1290_vm10 = vcmp.eq.s32.totalorder %v3204_v34, %v1289_v48  ;;  %v1368_v34 = vld [vmem:[#allocation2 + $0xc0] sm:$0xff] }
 0x557   :  { %2782 = vmatmul.mubr.msk.f32.vlgmr.msra.gmra.mxu0 %vm992_vm7, %v983_v51 }
 0x558   :  { %2816 = vmatprep.mubr.msk.f32.mxu0 %vm3080_vm0, %v3079_v0 }
 0x617   :  { %v1062_v52 = vpop.f32.mrf.mxu0 }
 0x618   :  { %v1063_v53 = vadd.f32 %v3162_v20, %v1062_v52  ;;  %v1093_v20 = vld [vmem:[#allocation2 + $0x60] sm:$0xff]  ;;  %v2560_v52 = vld [vmem:[#allocation2 + $0x2cf] ss:$0 sm:$0xff] }
 0x619   :  { %v2783_v54 = vpop.f32.mrf.mxu0  ;;  %2791 = vmatpush3.msra.mxu1 %v1093_v20  ;;  %v1693_v20 = vld [vmem:[#allocation2 + $0x158] sm:$0xff] }
 0x61a   :  { %v1069_v55 = vsel %vm1068_vm8, %v1063_v53, 0.0  ;;  %2795 = vmatprep.subr.mxu1 %v3079_v0 }
 0x61b   :  { %1070 = vadd.xlane.f32.xlu0 %v1069_v55  ;;  %v1291_v55 = vsel %vm1290_vm10, 1.0, %v3079_v0 }
 0x6a4   :  { %v1071_v56 = vpop.xlane.xlu0 %1070 }
 0x6a5   :  { %v1073_v57 = vmul.f32 0.03125, %v1071_v56  ;;  %v1371_v56 = vld [vmem:[#allocation2 + $0xd8] sm:$0xff] }
 0x6a7   :  { %v1074_v58 = vsub.f32 %v1063_v53, %v1073_v57  ;;  %v1370_v57 = vld [vmem:[#allocation2 + $0xd0] sm:$0xff] }
 0x6a9   :  { %v1075_v59 = vmul.f32 %v1074_v58, %v1074_v58 }
 0x6ab   :  { %v1076_v60 = vsel %vm1068_vm8, %v1075_v59, 0.0 }
 0x6ac   :  { %1077 = vadd.xlane.f32.xlu1 %v1076_v60  ;;  %v1451_v60 = vld [vmem:[#allocation2 + $0xe0] sm:$0xff] }
 0x735   :  { %v1078_v1 = vpop.xlane.xlu1 %1077 }
 0x736   :  { %v1079_v2 = vmul.f32 0.03125, %v1078_v1  ;;  %v1692_v1 = vld [vmem:[#allocation2 + $0x150] sm:$0xff] }
 0x738   :  { %v1080_v3 = vadd.f32 1e-06, %v1079_v2  ;;  %v2563_v2 = vld [vmem:[#allocation2 + $0x2d0] ss:$0 sm:$0xff] }
 0x73a   :  { %3017 = vrsqrt.f32 %v1080_v3 }
 0x73b   :  { %3019 = vtanh.f32 %v110_v22  ;;  %v1791_v22 = vld [vmem:[#allocation2 + $0x1c8] sm:$0xf] }
 0x747   :  { %v3018_v5 = vpop.eup %3017 }
 0x748   :  { %v1082_v7 = vmul.f32 %v3018_v5, %v1074_v58  ;;  %v3284_v29 = vpop.eup %3019  ;;  %v1452_v58 = vld [vmem:[#allocation2 + $0xe8] sm:$0xff] }
 0x74a   :  { %v1087_v9 = vmul.f32 %v2553_v6, %v1082_v7 }
 0x74c   :  { %v1092_v10 = vadd.f32 %v2554_v8, %v1087_v9 }
 0x74e   :  { %2793 = vmatmul.mubr.msk.f32.vlgmr.msra.gmra.mxu1 %vm208_vm4, %v1092_v10 }
 0x74f   :  { %2796 = vmatpush3.msra.mxu1 %v1183_v11  ;;  %2811 = vmatprep.mubr.msk.f32.mxu1 %vm3080_vm0, %v3079_v0  ;;  %v1690_v11 = vld [vmem:[#allocation2 + $0x140] sm:$0xff] }
 0x750   :  { %2797 = vmatprep.subr.mxu1 %v3079_v0 }
 0x751   :  { %2798 = vmatpush3.msra.mxu1 %v1182_v12  ;;  %v1689_v12 = vld [vmem:[#allocation2 + $0x138] sm:$0xff] }
 0x752   :  { %2799 = vmatprep.subr.mxu1 %v3079_v0 }
 0x753   :  { %2800 = vmatpush3.msra.mxu1 %v1181_v13  ;;  %v1688_v13 = vld [vmem:[#allocation2 + $0x130] sm:$0xff] }
 0x754   :  { %2801 = vmatprep.subr.mxu1 %v3079_v0 }
 0x755   :  { %2802 = vmatpush3.msra.mxu1 %v1180_v14  ;;  %v1687_v14 = vld [vmem:[#allocation2 + $0x128] sm:$0xff] }
 0x756   :  { %2803 = vmatprep.subr.mxu1 %v3079_v0 }
 0x757   :  { %2804 = vmatpush3.msra.mxu1 %v1179_v15  ;;  %v1686_v15 = vld [vmem:[#allocation2 + $0x120] sm:$0xff] }
 0x758   :  { %2805 = vmatprep.subr.mxu1 %v3079_v0 }
 0x759   :  { %2806 = vmatpush3.msra.mxu1 %v1178_v16  ;;  %v1685_v16 = vld [vmem:[#allocation2 + $0x118] sm:$0xff] }
 0x75a   :  { %2807 = vmatprep.subr.mxu1 %v3079_v0 }
 0x75b   :  { %2808 = vmatpush3.msra.mxu1 %v1177_v17  ;;  %v1684_v17 = vld [vmem:[#allocation2 + $0x110] sm:$0xff] }
 0x75c   :  { %2809 = vmatprep.subr.mxu1 %v3079_v0 }
 0x75d   :  { %2810 = vmatpush3.msra.mxu1 %v1176_v18  ;;  %v1683_v18 = vld [vmem:[#allocation2 + $0x108] sm:$0xff] }
 0x75e   :  { %2830 = vmatprep.subr.mxu1 %v3079_v0 }
 0x80e   :  { %v1171_v24 = vpop.f32.mrf.mxu1 }
 0x80f   :  { %v1172_v25 = vadd.f32 %v2555_v23, %v1171_v24  ;;  %v1790_v23 = vld [vmem:[#allocation2 + $0x1c0] sm:$0xff]  ;;  %v1789_v24 = vld [vmem:[#allocation2 + $0x1b8] sm:$0xff] }
 0x810   :  { %v2794_v26 = vpop.f32.mrf.mxu1 }
 0x811   :  { %v1175_v27 = vmax.f32 %v1172_v25, 0.0  ;;  %v1788_v25 = vld [vmem:[#allocation2 + $0x1b0] sm:$0xff] }
 0x813   :  { %2812 = vmatmul.mubr.msk.f32.vlgmr.msra.gmra.mxu1 %vm992_vm7, %v1175_v27 }
 0x814   :  { %2831 = vmatpush3.msra.mxu1 %v1453_v28  ;;  %2832 = vmatprep.mubr.msk.f32.mxu1 %vm3080_vm0, %v3079_v0  ;;  %v2568_v28 = vld [vmem:[#allocation2 + $0x2d1] ss:$0 sm:$0xff] }
 0x815   :  { %2842 = vmatprep.subr.mxu1 %v3079_v0 }
 0x817   :  { %2833 = vmatmul.mubr.msk.f32.vlgmr.msra.gmra.mxu1 %vm1454_vm9, %v3284_v29 }
 0x818   :  { %2844 = vmatprep.mubr.msk.f32.mxu1 %vm3080_vm0, %v3079_v0  ;;  %2843 = vmatpush3.msra.mxu1 %v1600_v62 }
 0x819   :  { %2876 = vmatprep.subr.mxu1 %v3079_v0 }
 0x8d3   :  { %v1258_v30 = vpop.f32.mrf.mxu1 }
 0x8d4   :  { %v1259_v31 = vadd.f32 %v2557_v21, %v1258_v30 }
 0x8d5   :  { %v2813_v32 = vpop.f32.mrf.mxu1 }
 0x8d6   :  { %v1262_v35 = vadd.f32 %v1259_v31, %v1092_v10  ;;  %v1691_v10 = vld [vmem:[#allocation2 + $0x148] sm:$0xff]  ;;  %v1900_v32 = vld [vmem:[#allocation2 + $0x1d8] sm:$0xff] }
 0x8d7   :  { %v3290_v36 = vpop.f32.mrf.mxu1 }
 0x8d8   :  { %v1265_v37 = vsel %vm1068_vm8, %v1262_v35, 0.0 }
 0x8d9   :  { %1266 = vadd.xlane.f32.xlu0 %v1265_v37  ;;  %v2834_v38 = vpop.f32.mrf.mxu1  ;;  %v2046_v37 = vld [vmem:[#allocation2 + $0x1e0] sm:$0xff] }
 0x8da   :  { %v1786_v38 = vld [vmem:[#allocation2 + $0x1a0] sm:$0xff] }
 0x962   :  { %v1267_v39 = vpop.xlane.xlu0 %1266 }
 0x963   :  { %v1268_v40 = vmul.f32 0.03125, %v1267_v39  ;;  %v1785_v39 = vld [vmem:[#allocation2 + $0x198] sm:$0xff] }
 0x965   :  { %v1269_v41 = vsub.f32 %v1262_v35, %v1268_v40  ;;  %v1783_v40 = vld [vmem:[#allocation2 + $0x188] sm:$0xff] }
 0x967   :  { %v1270_v42 = vmul.f32 %v1269_v41, %v1269_v41 }
 0x969   :  { %v1271_v43 = vsel %vm1068_vm8, %v1270_v42, 0.0  ;;  %v1781_v42 = vld [vmem:[#allocation2 + $0x178] sm:$0xff]  ;;  %vm2489_vm8 = vcmask 58368  }
 0x96a   :  { %1272 = vadd.xlane.f32.xlu0 %v1271_v43  ;;  %v1780_v43 = vld [vmem:[#allocation2 + $0x170] sm:$0xff] }
 0x9f3   :  { %v1273_v44 = vpop.xlane.xlu0 %1272 }
 0x9f4   :  { %v1274_v45 = vmul.f32 0.03125, %v1273_v44  ;;  %v1779_v44 = vld [vmem:[#allocation2 + $0x168] sm:$0xff] }
 0x9f6   :  { %v1275_v46 = vadd.f32 1e-06, %v1274_v45  ;;  %v2569_v45 = vld [vmem:[#allocation2 + $0x2d2] ss:$0 sm:$0xff] }
 0x9f8   :  { %3021 = vrsqrt.f32 %v1275_v46 }
 0xa05   :  { %v3022_v49 = vpop.eup %3021 }
 0xa06   :  { %v1277_v51 = vmul.f32 %v3022_v49, %v1269_v41  ;;  %v1782_v41 = vld [vmem:[#allocation2 + $0x180] sm:$0xff] }
 0xa08   :  { %v1282_v53 = vmul.f32 %v2559_v50, %v1277_v51 }
 0xa0a   :  { %v1287_v54 = vadd.f32 %v2560_v52, %v1282_v53 }
 0xa0c   :  { %2815 = vmatpush3.msk.msra.mxu0 %vm396_vm5, %v1287_v54  ;;  %vm1704_vm5 = vcmask 1043456   ;;  %v2572_v54 = vld [vmem:[#allocation2 + $0x2d3] ss:$0 sm:$0xff] }
 0xa0d   :  { %2817 = vmatmul.mubr.msk.f32.vlgmr.msra.gmra.mxu0 %vm392_vm6, %v1291_v55  ;;  %2819 = vmatprep.subr.mxu0 %v3079_v0 }
 0xa0e   :  { %2820 = vmatpush3.msra.mxu0 %v1371_v56  ;;  %2827 = vmatprep.mubr.msk.f32.mxu0 %vm3080_vm0, %v3079_v0 }
 0xa0f   :  { %2821 = vmatprep.subr.mxu0 %v3079_v0 }
 0xa10   :  { %2822 = vmatpush3.msra.mxu0 %v1370_v57 }
 0xa11   :  { %2823 = vmatprep.subr.mxu0 %v3079_v0 }
 0xa12   :  { %2824 = vmatpush3.msra.mxu0 %v1369_v33 }
 0xa13   :  { %2825 = vmatprep.subr.mxu0 %v3079_v0 }
 0xa14   :  { %2826 = vmatpush3.msra.mxu0 %v1368_v34 }
 0xa15   :  { %2835 = vmatprep.subr.mxu0 %v3079_v0 }
 0xacd   :  { %v1364_v59 = vpop.f32.mrf.mxu0 }
 0xace   :  { %2828 = vmatmul.mubr.msk.f32.vlgmr.msra.gmra.mxu0 %vm208_vm4, %v1364_v59 }
 0xacf   :  { %2836 = vmatpush3.msra.mxu0 %v1452_v58  ;;  %v2818_v61 = vpop.f32.mrf.mxu0  ;;  %2839 = vmatprep.mubr.msk.f32.mxu0 %vm3080_vm0, %v3079_v0 }
 0xad0   :  { %2837 = vmatprep.subr.mxu0 %v3079_v0 }
 0xad1   :  { %2838 = vmatpush3.msra.mxu0 %v1451_v60 }
 0xad2   :  { %2840 = vmatmul.mubr.msk.f32.vlgmr.msra.gmra.mxu0 %vm40_vm3, %v3126_v4  ;;  %2847 = vmatprep.subr.mxu0 %v3079_v0 }
 0xad3   :  { %2873 = vmatprep.mubr.msk.f32.mxu0 %vm3080_vm0, %v3079_v0  ;;  %2848 = vmatpush3.msk.msra.mxu0 %vm1704_vm5, %v1694_v63 }
 0xad4   :  { %2849 = vmatprep.subr.mxu0 %v3079_v0 }
 0xad5   :  { %2850 = vmatpush3.msra.mxu0 %v1693_v20 }
 0xad6   :  { %2851 = vmatprep.subr.mxu0 %v3079_v0 }
 0xad7   :  { %2852 = vmatpush3.msra.mxu0 %v1692_v1 }
 0xad8   :  { %2853 = vmatprep.subr.mxu0 %v3079_v0 }
 0xad9   :  { %2854 = vmatpush3.msra.mxu0 %v1691_v10  ;;  %v3389_v10 = vld [vmem:[%s3484_s0] sm:$0x3] }
 0xada   :  { %2855 = vmatprep.subr.mxu0 %v3079_v0 }
 0xadb   :  { %2856 = vmatpush3.msra.mxu0 %v1690_v11 }
 0xadc   :  { %2857 = vmatprep.subr.mxu0 %v3079_v0 }
 0xadd   :  { %2858 = vmatpush3.msra.mxu0 %v1689_v12 }
 0xade   :  { %2859 = vmatprep.subr.mxu0 %v3079_v0 }
 0xadf   :  { %2860 = vmatpush3.msra.mxu0 %v1688_v13 }
 0xae0   :  { %2861 = vmatprep.subr.mxu0 %v3079_v0 }
 0xae1   :  { %2862 = vmatpush3.msra.mxu0 %v1687_v14  ;;  %v2136_v14 = vld [vmem:[#allocation2 + $0x248] sm:$0xf] }
 0xae2   :  { %2863 = vmatprep.subr.mxu0 %v3079_v0 }
 0xae3   :  { %2864 = vmatpush3.msra.mxu0 %v1686_v15 }
 0xae4   :  { %2865 = vmatprep.subr.mxu0 %v3079_v0 }
 0xae5   :  { %2866 = vmatpush3.msra.mxu0 %v1685_v16  ;;  %v2135_v16 = vld [vmem:[#allocation2 + $0x240] sm:$0xff] }
 0xae6   :  { %2867 = vmatprep.subr.mxu0 %v3079_v0 }
 0xae7   :  { %2868 = vmatpush3.msra.mxu0 %v1684_v17  ;;  %v2134_v17 = vld [vmem:[#allocation2 + $0x238] sm:$0xff] }
 0xae8   :  { %2869 = vmatprep.subr.mxu0 %v3079_v0 }
 0xae9   :  { %2870 = vmatpush3.msra.mxu0 %v1683_v18  ;;  %v2133_v18 = vld [vmem:[#allocation2 + $0x230] sm:$0xff] }
 0xaea   :  { %2871 = vmatprep.subr.mxu0 %v3079_v0 }
 0xaeb   :  { %2872 = vmatpush3.msra.mxu0 %v1682_v19  ;;  %v2132_v19 = vld [vmem:[#allocation2 + $0x228] sm:$0xff] }
 0xaec   :  { %2905 = vmatprep.subr.mxu0 %v3079_v0 }
 0xb8e   :  { %v1446_v3 = vpop.f32.mrf.mxu0 }
 0xb8f   :  { %v1447_v5 = vadd.f32 %v2563_v2, %v1446_v3 }
 0xb90   :  { %v2829_v6 = vpop.f32.mrf.mxu0 }
 0xb91   :  { %3023 = vtanh.f32 %v1447_v5 }
 0xb92   :  { %v1596_v7 = vpop.f32.mrf.mxu0 }
 0xb93   :  { %v1597_v26 = vadd.f32 %v1596_v7, %v3290_v36  ;;  %v1787_v36 = vld [vmem:[#allocation2 + $0x1a8] sm:$0xff] }
 0xb94   :  { %v2841_v8 = vpop.f32.mrf.mxu0 }
 0xb95   :  { %v1899_v8 = vld [vmem:[#allocation2 + $0x1d0] sm:$0xff] }
 0xb9e   :  { %v3320_v9 = vpop.eup %3023 }
 0xb9f   :  { %2845 = vmatmul.mubr.msk.f32.vlgmr.msra.gmra.mxu1 %vm1454_vm9, %v3320_v9 }
 0xba0   :  { %2902 = vmatprep.mubr.msk.f32.mxu1 %vm3080_vm0, %v3079_v0  ;;  %2877 = vmatpush3.msk.msra.mxu1 %vm1704_vm5, %v1791_v22  ;;  %v2131_v22 = vld [vmem:[#allocation2 + $0x220] sm:$0xff] }
 0xba1   :  { %2878 = vmatprep.subr.mxu1 %v3079_v0 }
 0xba2   :  { %2879 = vmatpush3.msra.mxu1 %v1790_v23  ;;  %v2130_v23 = vld [vmem:[#allocation2 + $0x218] sm:$0xff] }
 0xba3   :  { %2880 = vmatprep.subr.mxu1 %v3079_v0 }
 0xba4   :  { %2881 = vmatpush3.msra.mxu1 %v1789_v24  ;;  %v2129_v24 = vld [vmem:[#allocation2 + $0x210] sm:$0xff] }
 0xba5   :  { %2882 = vmatprep.subr.mxu1 %v3079_v0 }
 0xba6   :  { %2883 = vmatpush3.msra.mxu1 %v1788_v25  ;;  %v2128_v25 = vld [vmem:[#allocation2 + $0x208] sm:$0xff] }
 0xba7   :  { %2884 = vmatprep.subr.mxu1 %v3079_v0 }
 0xba8   :  { %2885 = vmatpush3.msra.mxu1 %v1787_v36 }
 0xba9   :  { %2886 = vmatprep.subr.mxu1 %v3079_v0 }
 0xbaa   :  { %2887 = vmatpush3.msra.mxu1 %v1786_v38  ;;  %v2578_v38 = vld [vmem:[#allocation2 + $0x2d4] ss:$0 sm:$0xff] }
 0xbab   :  { %2888 = vmatprep.subr.mxu1 %v3079_v0 }
 0xbac   :  { %2889 = vmatpush3.msra.mxu1 %v1785_v39 }
 0xbad   :  { %2890 = vmatprep.subr.mxu1 %v3079_v0 }
 0xc5f   :  { %v1670_v27 = vpop.f32.mrf.mxu1 }
 0xc60   :  { %v1674_v21 = vadd.f32 %v1670_v27, %v1597_v26  ;;  %v2127_v26 = vld [vmem:[#allocation2 + $0x200] sm:$0xff]  ;;  %v2126_v27 = vld [vmem:[#allocation2 + $0x1f8] sm:$0xff] }
 0xc61   :  { %v2846_v30 = vpop.f32.mrf.mxu1 }
 0xc62   :  { %v1680_v31 = vadd.f32 %v2568_v28, %v1674_v21  ;;  %v2125_v28 = vld [vmem:[#allocation2 + $0x1f0] sm:$0xff]  ;;  %v2124_v21 = vld [vmem:[#allocation2 + $0x1e8] sm:$0xff] }
 0xc63   :  { %v2231_v30 = vld [vmem:[#allocation2 + $0x2b0] sm:$0xf] }
 0xc64   :  { %3025 = vtanh.f32 %v1680_v31  ;;  %v2230_v31 = vld [vmem:[#allocation2 + $0x2a8] sm:$0xff] }
 0xc71   :  { %v3026_v35 = vpop.eup %3025 }
 0xc72   :  { %2874 = vmatmul.mubr.msk.f32.vlgmr.msra.gmra.mxu0 %vm1700_vm11, %v3026_v35  ;;  %v2228_v35 = vld [vmem:[#allocation2 + $0x298] sm:$0xff] }
 0xc73   :  { %2906 = vmatpush3.msra.mxu0 %v1900_v32  ;;  %2907 = vmatprep.mubr.msk.f32.mxu0 %vm3080_vm0, %v3079_v0  ;;  %v2229_v32 = vld [vmem:[#allocation2 + $0x2a0] sm:$0xff] }
 0xc74   :  { %2915 = vmatprep.subr.mxu0 %v3079_v0 }
 0xc76   :  { %2908 = vmatmul.mubr.msk.f32.vlgmr.msra.gmra.mxu0 %vm1454_vm9, %v3284_v29  ;;  %v1784_v29 = vld [vmem:[#allocation2 + $0x190] sm:$0xff] }
 0xc77   :  { %2916 = vmatpush3.msra.mxu0 %v2046_v37  ;;  %2917 = vmatprep.mubr.msk.f32.mxu0 %vm3080_vm0, %v3079_v0 }
 0xc78   :  { %2949 = vmatprep.subr.mxu0 %v3079_v0  ;;  %2891 = vmatpush3.msra.mxu1 %v1784_v29 }
 0xc79   :  { %2892 = vmatprep.subr.mxu1 %v3079_v0 }
 0xc7a   :  { %2918 = vmatmul.mubr.msk.f32.vlgmr.msra.gmra.mxu0 %vm1454_vm9, %v3320_v9  ;;  %2893 = vmatpush3.msra.mxu1 %v1783_v40 }
 0xc7b   :  { %2975 = vmatprep.mubr.msk.f32.mxu0 %vm3080_vm0, %v3079_v0  ;;  %2894 = vmatprep.subr.mxu1 %v3079_v0 }
 0xc7c   :  { %2895 = vmatpush3.msra.mxu1 %v1782_v41  ;;  %2950 = vmatpush3.msk.msra.mxu0 %vm1704_vm5, %v2231_v30  ;;  %v2227_v41 = vld [vmem:[#allocation2 + $0x290] sm:$0xff] }
 0xc7d   :  { %2896 = vmatprep.subr.mxu1 %v3079_v0  ;;  %2951 = vmatprep.subr.mxu0 %v3079_v0 }
 0xc7e   :  { %2897 = vmatpush3.msra.mxu1 %v1781_v42  ;;  %2952 = vmatpush3.msra.mxu0 %v2230_v31  ;;  %v2226_v42 = vld [vmem:[#allocation2 + $0x288] sm:$0xff] }
 0xc7f   :  { %2898 = vmatprep.subr.mxu1 %v3079_v0  ;;  %2953 = vmatprep.subr.mxu0 %v3079_v0 }
 0xc80   :  { %2899 = vmatpush3.msra.mxu1 %v1780_v43  ;;  %2954 = vmatpush3.msra.mxu0 %v2229_v32  ;;  %v2225_v43 = vld [vmem:[#allocation2 + $0x280] sm:$0xff] }
 0xc81   :  { %2900 = vmatprep.subr.mxu1 %v3079_v0  ;;  %2955 = vmatprep.subr.mxu0 %v3079_v0 }
 0xc82   :  { %2901 = vmatpush3.msra.mxu1 %v1779_v44  ;;  %2956 = vmatpush3.msra.mxu0 %v2228_v35  ;;  %v2224_v44 = vld [vmem:[#allocation2 + $0x278] sm:$0xff] }
 0xc83   :  { %2910 = vmatprep.subr.mxu1 %v3079_v0  ;;  %2957 = vmatprep.subr.mxu0 %v3079_v0 }
 0xc84   :  { %2958 = vmatpush3.msra.mxu0 %v2227_v41 }
 0xc85   :  { %2959 = vmatprep.subr.mxu0 %v3079_v0 }
 0xc86   :  { %2960 = vmatpush3.msra.mxu0 %v2226_v42 }
 0xc87   :  { %2961 = vmatprep.subr.mxu0 %v3079_v0 }
 0xc88   :  { %2962 = vmatpush3.msra.mxu0 %v2225_v43 }
 0xc89   :  { %2963 = vmatprep.subr.mxu0 %v3079_v0 }
 0xc8a   :  { %2964 = vmatpush3.msra.mxu0 %v2224_v44 }
 0xc8b   :  { %2965 = vmatprep.subr.mxu0 %v3079_v0 }
 0xd32   :  { %v1774_v46 = vpop.f32.mrf.mxu0 }
 0xd33   :  { %v1775_v47 = vadd.f32 %v2569_v45, %v1774_v46  ;;  %v2223_v45 = vld [vmem:[#allocation2 + $0x270] sm:$0xff]  ;;  %v2222_v46 = vld [vmem:[#allocation2 + $0x268] sm:$0xff] }
 0xd34   :  { %v2875_v48 = vpop.f32.mrf.mxu0  ;;  %2966 = vmatpush3.msra.mxu0 %v2223_v45 }
 0xd35   :  { %3027 = vtanh.f32 %v1775_v47  ;;  %2967 = vmatprep.subr.mxu0 %v3079_v0  ;;  %v2221_v47 = vld [vmem:[#allocation2 + $0x260] sm:$0xff]  ;;  %v2220_v48 = vld [vmem:[#allocation2 + $0x258] sm:$0xff] }
 0xd36   :  { %v3364_v49 = vpop.f32.mrf.mxu0  ;;  %2968 = vmatpush3.msra.mxu0 %v2222_v46 }
 0xd37   :  { %2969 = vmatprep.subr.mxu0 %v3079_v0 }
 0xd38   :  { %v2909_v50 = vpop.f32.mrf.mxu0  ;;  %2970 = vmatpush3.msra.mxu0 %v2221_v47 }
 0xd39   :  { %2971 = vmatprep.subr.mxu0 %v3079_v0  ;;  %v2579_v50 = vld [vmem:[#allocation2 + $0x2d5] ss:$0 sm:$0xff] }
 0xd3a   :  { %v3366_v51 = vpop.f32.mrf.mxu0  ;;  %2972 = vmatpush3.msra.mxu0 %v2220_v48 }
 0xd3b   :  { %2973 = vmatprep.subr.mxu0 %v3079_v0 }
 0xd3c   :  { %v2919_v52 = vpop.f32.mrf.mxu0 }
 0xd42   :  { %v3028_v53 = vpop.eup %3027 }
 0xd43   :  { %2903 = vmatmul.mubr.msk.f32.vlgmr.msra.gmra.mxu1 %vm1700_vm11, %v3028_v53 }
 0xd44   :  { %2912 = vmatprep.mubr.msk.f32.mxu1 %vm3080_vm0, %v3079_v0  ;;  %2911 = vmatpush3.msra.mxu1 %v1899_v8 }
 0xd45   :  { %2920 = vmatprep.subr.mxu1 %v3079_v0 }
 0xe03   :  { %v1869_v55 = vpop.f32.mrf.mxu1 }
 0xe04   :  { %v3371_v56 = vadd.f32 %v2572_v54, %v1869_v55  ;;  %v2315_v55 = vld [vmem:[#allocation2 + $0x2c0] sm:$0xff] }
 0xe05   :  { %v2904_v57 = vpop.f32.mrf.mxu1 }
 0xe06   :  { %v1874_v33 = vmin.f32 %v3371_v56, 20.0  ;;  %1895 = vrot.lane.b32.xlu0 %v3371_v56, %s3083_s12  ;;  %vm1873_vm12 = vcmp.gt.f32.partialorder %v3371_v56, 20.0  ;;  %v2314_v57 = vld [vmem:[#allocation2 + $0x2b8] sm:$0xff] }
 0xe08   :  { %v1875_v34 = vmul.f32 1.442695, %v1874_v33  ;;  %v2582_v33 = vld [vmem:[#allocation2 + $0x2d6] ss:$0 sm:$0xff] }
 0xe0a   :  { %3029 = vpow2.f32 %v1875_v34  ;;  %2460 = vrot.lane.b32.xlu0 %v3126_v4, %s3085_s14 }
 0xe17   :  { %v3030_v58 = vpop.eup %3029 }
 0xe18   :  { %v1877_v59 = vadd.f32 1.0, %v3030_v58 }
 0xe1a   :  { %3031 = vlog2.f32 %v1877_v59 }
 0xe27   :  { %v3032_v60 = vpop.eup %3031 }
 0xe28   :  { %v1879_v61 = vmul.f32 0.6931472, %v3032_v60 }
 0xe2a   :  { %v3380_v62 = vsel %vm1873_vm12, %v3371_v56, %v1879_v61  ;;  %v2585_v61 = vld [vmem:[#allocation2 + $0x2d7] ss:$0 sm:$0xff] }
 0xe2b   :  { %v1881_v63 = vadd.f32 1e-07, %v3380_v62 }
 0xe2d   :  { %3033 = vrsqrt.f32 %v1881_v63  ;;  %vm1884_vm13 = vcmp.eq.f32.partialorder %v1881_v63, inf  ;;  %v1887_v2 = vand.u32 2147483648, %v1881_v63  ;;  %vm1886_vm14 = vcmp.eq.f32.partialorder %v1881_v63, 0.0 }
 0xe3a   :  { %v3034_v20 = vpop.eup %3033 }
 0xe3b   :  { %v1883_v1 = vmul.f32 %v3034_v20, %v1881_v63 }
 0xe3d   :  { %v1885_v3 = vsel %vm1884_vm13, %v1881_v63, %v1883_v1 }
 0xe3e   :  { %v1888_v4 = vsel %vm1886_vm14, %v1887_v2, %v1885_v3 }
 0xe3f   :  { %1890 = vrot.lane.b32.xlu1 %v1888_v4, %s3089_s17 }
 0xe78   :  { %v1896_v5 = vpop.permute.xlu0 %1895 }
 0xe7c   :  { %v2461_v6 = vpop.permute.xlu0 %2460 }
 0xe7d   :  { %v2463_v7 = vsel %vm2444_vm15, %v2461_v6, 0.0 }
 0xe7e   :  { %2464 = vadd.xlane.f32.xlu0 %v2463_v7 }
 0xeb1   :  { %v1891_v9 = vpop.permute.xlu1 %1890 }
 0xeb2   :  { %v1893_v11 = vmul.f32 %v3389_v10, %v1891_v9 }
 0xeb4   :  { %v3392_v12 = vadd.f32 %v1896_v5, %v1893_v11 }
 0xeb6   :  { %1972 = vrot.lane.b32.xlu1 %v3392_v12, %s3083_s12  ;;  %v3397_v13 = vsub.f32 %v3392_v12, %v1896_v5 }
 0xeb8   :  { %v2478_v30 = vmul.f32 %v3397_v13, %v3397_v13 }
 0xf28   :  { %v1973_v15 = vpop.permute.xlu1 %1972 }
 0xf29   :  { %2913 = vmatmul.mubr.msk.f32.vlgmr.msra.gmra.mxu1 %vm1454_vm9, %v1973_v15  ;;  %vm3489_vm9 = vcmask 1041408  }
 0xf2a   :  { %2921 = vmatpush3.msk.msra.mxu1 %vm1704_vm5, %v2136_v14  ;;  %2946 = vmatprep.mubr.msk.f32.mxu1 %vm3080_vm0, %v3079_v0  ;;  %vm3490_vm10 = vmmov %vm3489_vm9  ;;  %vm2519_vm5 = vcmask 457728  }
 0xf2b   :  { %2922 = vmatprep.subr.mxu1 %v3079_v0 }
 0xf2c   :  { %2923 = vmatpush3.msra.mxu1 %v2135_v16 }
 0xf2d   :  { %2924 = vmatprep.subr.mxu1 %v3079_v0 }
 0xf2e   :  { %2925 = vmatpush3.msra.mxu1 %v2134_v17 }
 0xf2f   :  { %2926 = vmatprep.subr.mxu1 %v3079_v0 }
 0xf30   :  { %2927 = vmatpush3.msra.mxu1 %v2133_v18 }
 0xf31   :  { %2928 = vmatprep.subr.mxu1 %v3079_v0 }
 0xf32   :  { %2929 = vmatpush3.msra.mxu1 %v2132_v19 }
 0xf33   :  { %2930 = vmatprep.subr.mxu1 %v3079_v0 }
 0xf34   :  { %2931 = vmatpush3.msra.mxu1 %v2131_v22 }
 0xf35   :  { %2932 = vmatprep.subr.mxu1 %v3079_v0 }
 0xf36   :  { %2933 = vmatpush3.msra.mxu1 %v2130_v23  ;;  %v2465_v23 = vpop.xlane.xlu0 %2464 }
 0xf37   :  { %2934 = vmatprep.subr.mxu1 %v3079_v0 }
 0xf38   :  { %2935 = vmatpush3.msra.mxu1 %v2129_v24 }
 0xf39   :  { %2936 = vmatprep.subr.mxu1 %v3079_v0 }
 0xf3a   :  { %2937 = vmatpush3.msra.mxu1 %v2128_v25 }
 0xf3b   :  { %2938 = vmatprep.subr.mxu1 %v3079_v0 }
 0xf3c   :  { %2939 = vmatpush3.msra.mxu1 %v2127_v26  ;;  %v2466_v26 = vmul.f32 0.0625, %v2465_v23 }
 0xf3d   :  { %2940 = vmatprep.subr.mxu1 %v3079_v0 }
 0xf3e   :  { %2941 = vmatpush3.msra.mxu1 %v2126_v27 }
 0xf3f   :  { %2942 = vmatprep.subr.mxu1 %v3079_v0 }
 0xf40   :  { %2943 = vmatpush3.msra.mxu1 %v2125_v28  ;;  %v2468_v28 = vmul.f32 %v3392_v12, %v3392_v12 }
 0xf41   :  { %2944 = vmatprep.subr.mxu1 %v3079_v0 }
 0xf42   :  { %2945 = vmatpush3.msra.mxu1 %v2124_v21  ;;  %v2469_v21 = vmul.f32 %v2468_v28, %v2466_v26 }
 0xf43   :  { %2978 = vmatprep.subr.mxu1 %v3079_v0 }
 0xfe9   :  { %v2042_v37 = vpop.f32.mrf.mxu1 }
 0xfea   :  { %v2043_v36 = vadd.f32 %v2042_v37, %v3364_v49  ;;  %v2219_v49 = vld [vmem:[#allocation2 + $0x250] sm:$0xff] }
 0xfeb   :  { %v2914_v39 = vpop.f32.mrf.mxu1  ;;  %2974 = vmatpush3.msra.mxu0 %v2219_v49 }
 0xfec   :  { %v2117_v29 = vadd.f32 %v3366_v51, %v2043_v36 }
 0xfee   :  { %v2123_v40 = vadd.f32 %v2578_v38, %v2117_v29 }
 0xff0   :  { %2947 = vmatmul.mubr.msk.f32.vlgmr.msra.gmra.mxu1 %vm1700_vm11, %v2123_v40 }
 0xff1   :  { %2982 = vmatprep.mubr.msk.f32.mxu1 %vm3080_vm0, %v3079_v0  ;;  %2979 = vmatpush3.msra.mxu1 %v2315_v55 }
 0xff2   :  { %2980 = vmatprep.subr.mxu1 %v3079_v0 }
 0xff3   :  { %2981 = vmatpush3.msra.mxu1 %v2314_v57 }
0x10b0   :  { %v2214_v51 = vpop.f32.mrf.mxu1 }
0x10b1   :  { %v2215_v52 = vadd.f32 %v2579_v50, %v2214_v51 }
0x10b2   :  { %v2948_v53 = vpop.f32.mrf.mxu1 }
0x10b3   :  { %3035 = vtanh.f32 %v2215_v52 }
0x10c0   :  { %v3036_v54 = vpop.eup %3035 }
0x10c1   :  { %2976 = vmatmul.mubr.msk.f32.vlgmr.msra.gmra.mxu0 %vm1700_vm11, %v3036_v54  ;;  %vm2522_vm11 = vcmask 531456  }
0x1181   :  { %v2309_v34 = vpop.f32.mrf.mxu0 }
0x1182   :  { %v2310_v58 = vadd.f32 %v2582_v33, %v2309_v34 }
0x1183   :  { %v2977_v59 = vpop.f32.mrf.mxu0 }
0x1184   :  { %3037 = vtanh.f32 %v2310_v58 }
0x1191   :  { %v3038_v60 = vpop.eup %3037 }
0x1192   :  { %2983 = vmatmul.mubr.msk.f32.vlgmr.msra.gmra.mxu1 %vm40_vm3, %v3038_v60 }
0x1252   :  { %v2390_v63 = vpop.f32.mrf.mxu1 }
0x1253   :  { %v3437_v20 = vadd.f32 %v2585_v61, %v2390_v63 }
0x1254   :  { %v2984_v1 = vpop.f32.mrf.mxu1 }
0x1255   :  { %v2395_v2 = vmin.f32 %v3437_v20, 20.0  ;;  %vm2394_vm0 = vcmp.gt.f32.partialorder %v3437_v20, 20.0  ;;  %v2423_v9 = vsub.f32 %v3389_v10, %v3437_v20 }
0x1257   :  { %v2396_v3 = vmul.f32 1.442695, %v2395_v2  ;;  %v2424_v11 = vmul.f32 %v2423_v9, %v2423_v9 }
0x1259   :  { %3039 = vpow2.f32 %v2396_v3 }
0x1266   :  { %v3040_v4 = vpop.eup %3039 }
0x1267   :  { %v2398_v0 = vadd.f32 1.0, %v3040_v4 }
0x1269   :  { %3041 = vlog2.f32 %v2398_v0 }
0x1276   :  { %v3042_v5 = vpop.eup %3041 }
0x1277   :  { %v2400_v6 = vmul.f32 0.6931472, %v3042_v5 }
0x1279   :  { %v3442_v7 = vsel %vm2394_vm0, %v3437_v20, %v2400_v6 }
0x127a   :  { %3043 = vrcp.f32 %v3442_v7  ;;  %v2402_v36 = vadd.f32 1e-07, %v3442_v7 }
0x127b   :  { %3045 = vlog2.f32 %v3380_v62 }
0x127c   :  { %3047 = vrcp.f32 %v3380_v62  ;;  %vm2405_vm2 = vcmp.eq.f32.partialorder %v2402_v36, inf  ;;  %v2408_v41 = vand.u32 2147483648, %v2402_v36  ;;  %vm2407_vm6 = vcmp.eq.f32.partialorder %v2402_v36, 0.0 }
0x127d   :  { %3049 = vlog2.f32 %v3442_v7 }
0x127e   :  { %3051 = vrsqrt.f32 %v2402_v36 }
0x1287   :  { %v3044_v8 = vpop.eup %3043 }
0x1288   :  { %2426 = vrot.lane.b32.xlu1 %v3044_v8, %s3081_s22  ;;  %v3046_v16 = vpop.eup %3045  ;;  %v2516_v8 = vsel %vm40_vm3, %v3437_v20, %v3442_v7 }
0x1289   :  { %v2471_v17 = vmul.f32 0.6931472, %v3046_v16  ;;  %v3048_v18 = vpop.eup %3047 }
0x128a   :  { %v3050_v19 = vpop.eup %3049 }
0x128b   :  { %v2422_v22 = vmul.f32 0.6931472, %v3050_v19  ;;  %v3052_v38 = vpop.eup %3051 }
0x128c   :  { %v2404_v40 = vmul.f32 %v3052_v38, %v2402_v36 }
0x128e   :  { %v2406_v12 = vsel %vm2405_vm2, %v2402_v36, %v2404_v40 }
0x128f   :  { %v2409_v13 = vsel %vm2407_vm6, %v2408_v41, %v2406_v12 }
0x12fa   :  { %v2427_v14 = vpop.permute.xlu1 %2426 }
0x12fb   :  { %v2429_v15 = vmul.f32 %v2427_v14, %v2424_v11 }
0x12fd   :  { %2431 = vrot.lane.b32.xlu1 %v2429_v15, %s3086_s15 }
0x1301   :  { %2473 = vrot.lane.b32.xlu1 %v2471_v17, %s3089_s17 }
0x1305   :  { %2480 = vrot.lane.b32.xlu1 %v3048_v18, %s3089_s17 }
0x136f   :  { %v2432_v24 = vpop.permute.xlu1 %2431 }
0x1370   :  { %v2434_v25 = vadd.f32 %v2432_v24, %v2422_v22 }
0x1372   :  { %2436 = vrot.lane.b32.xlu1 %v2434_v25, %s3086_s15 }
0x1373   :  { %v2474_v27 = vpop.permute.xlu1 %2473 }
0x1374   :  { %v2476_v32 = vsub.f32 %v2469_v21, %v2474_v27 }
0x1377   :  { %v2481_v31 = vpop.permute.xlu1 %2480 }
0x1378   :  { %v2483_v35 = vmul.f32 %v2481_v31, %v2478_v30 }
0x137a   :  { %v2484_v37 = vsub.f32 %v2476_v32, %v2483_v35 }
0x13e4   :  { %v2437_v39 = vpop.permute.xlu1 %2436 }
0x13e5   :  { %v2439_v29 = vmul.f32 %v3389_v10, %v2437_v39 }
0x13e7   :  { %2441 = vrot.lane.b32.xlu1 %v2439_v29, %s3085_s14 }
0x13eb   :  { %2486 = vrot.lane.b32.xlu1 %v2484_v37, %s3083_s12 }
0x13ef   :  { %2411 = vrot.lane.b32.xlu1 %v2409_v13, %s3084_s13 }
0x13f3   :  { %2416 = vrot.lane.b32.xlu1 %v3437_v20, %s3082_s2 }
0x1459   :  { %v2442_v42 = vpop.permute.xlu1 %2441 }
0x145a   :  { %v2445_v43 = vsel %vm2444_vm15, %v2442_v42, 0.0 }
0x145b   :  { %2446 = vadd.xlane.f32.xlu1 %v2445_v43 }
0x145d   :  { %v2487_v44 = vpop.permute.xlu1 %2486 }
0x145e   :  { %v2490_v45 = vsel %vm2489_vm8, %v2487_v44, 0.0 }
0x145f   :  { %2491 = vadd.xlane.f32.xlu0 %v2490_v45 }
0x1461   :  { %v2412_v46 = vpop.permute.xlu1 %2411 }
0x1462   :  { %v2414_v48 = vmul.f32 %v3389_v10, %v2412_v46 }
0x1465   :  { %v2417_v47 = vpop.permute.xlu1 %2416 }
0x1466   :  { %v2419_v49 = vadd.f32 %v2417_v47, %v2414_v48 }
0x1475   :  { %2506 = vrot.lane.b32.xlu0 %v2419_v49, %s3081_s22 }
0x1479   :  { %2509 = vrot.lane.b32.xlu0 %v3371_v56, %s3082_s2 }
0x147d   :  { %2513 = vrot.lane.b32.xlu0 %v3380_v62, %s3082_s2 }
0x14e4   :  { %v2447_v50 = vpop.xlane.xlu1 %2446 }
0x14e5   :  { %v2449_v51 = vmul.f32 0.0625, %v2447_v50 }
0x14e7   :  { %v2450_v52 = vmul.f32 0.5, %v2449_v51 }
0x14e8   :  { %v2492_v53 = vpop.xlane.xlu0 %2491 }
0x14e9   :  { %v2451_v54 = vsel %vm3489_vm9, %v2450_v52, 0.0  ;;  %v2494_v55 = vmul.f32 0.125, %v2492_v53 }
0x14ea   :  { %v2452_v57 = vrot.slane %v2451_v54, 4 }
0x14eb   :  { %v2495_v33 = vmul.f32 0.5, %v2494_v55 }
0x14ec   :  { %v2453_v34 = vadd.f32 %v2452_v57, %v2451_v54  ;;  %v2507_v60 = vpop.permute.xlu0 %2506 }
0x14ed   :  { %v2496_v10 = vsel %vm3490_vm10, %v2495_v33, 0.0  ;;  %v2517_v11 = vsel %vm208_vm4, %v2516_v8, %v2507_v60 }
0x14ee   :  { %v2454_v58 = vrot.slane %v2453_v34, 2  ;;  %v2497_v59 = vrot.slane %v2496_v10, 4 }
0x14f0   :  { %v2455_v61 = vadd.f32 %v2454_v58, %v2453_v34  ;;  %v2498_v56 = vadd.f32 %v2497_v59, %v2496_v10  ;;  %v2510_v2 = vpop.permute.xlu0 %2509 }
0x14f1   :  { %v2518_v14 = vsel %vm982_vm1, %v2517_v11, %v2510_v2 }
0x14f2   :  { %v2456_v63 = vrot.slane %v2455_v61, 1  ;;  %v2499_v1 = vrot.slane %v2498_v56, 2 }
0x14f4   :  { %v2500_v62 = vadd.f32 %v2499_v1, %v2498_v56  ;;  %v2457_v3 = vadd.f32 %v2456_v63, %v2455_v61  ;;  %v2514_v9 = vpop.permute.xlu0 %2513 }
0x14f5   :  { %v2520_v16 = vsel %vm2519_vm5, %v2518_v14, %v2514_v9 }
0x14f6   :  { %v2501_v4 = vrot.slane %v2500_v62, 1  ;;  %v2459_v5 = vmul.f32 0.5, %v2457_v3 }
0x14f8   :  { %v2502_v0 = vadd.f32 %v2501_v4, %v2500_v62 }
0x14fa   :  { %v2503_v6 = vmul.f32 0.5, %v2502_v0 }
0x14fc   :  { %v2504_v15 = vadd.f32 %v2503_v6, %v2459_v5 }
0x14fe   :  { %v2521_v17 = vsel %vm992_vm7, %v2520_v16, %v2504_v15 }
0x14ff   :  { %v2523_v18 = vsel %vm2522_vm11, %v2521_v17, 0.0 }
0x1500   :  { %2524 = vst [vmem:[%s3487_s3] sm:$0x3] %v2523_v18 }
0x1501   :  { %2529 = vsyncpa [#allocation3], 1 }

</bundles_post_ra>
